<compile_context>
chip_gen: v5e
topology: v5e:2x2
jax: 0.10.0
libtpu: 0.0.40
codegen_flags: <defaults>
</compile_context>

<pallas_src>
import functools
import numpy as np
import jax
import jax.numpy as jnp
from jax.experimental import pallas as pl
from jax.experimental.pallas import tpu as pltpu


# ---------------------------------------------------------------------------
# Kernel: one batch tile per grid step, everything lane-dense 2-D, bf16 MXU.
# ---------------------------------------------------------------------------
def cnn1d_kernel(x_ref, w1b_ref, b1_ref, w2b_ref, b2_ref,
                 wl1_ref, bl1_ref, wl2_ref, bl2_ref,
                 wl3_ref, bl3_ref, wl4_ref, bl4_ref, out_ref):
    bf16 = jnp.bfloat16
    x = x_ref[...].astype(bf16)                                 # (TB, 30)

    # Conv1d(1,32,3) + ReLU as a single banded bf16 matmul -> (TB, 1024) slab.
    c1 = jnp.maximum(
        jnp.dot(x, w1b_ref[...], preferred_element_type=jnp.float32)
        + b1_ref[...], 0.0)

    # MaxPool1d(2): even-time half vs odd-time half (512 = 4 vregs, aligned).
    p1 = jnp.maximum(c1[:, :512], c1[:, 512:])                  # (TB, 512)

    # Conv1d(32,64,3) + ReLU as a single banded bf16 matmul -> (TB, 768) slab.
    c2 = jnp.maximum(
        jnp.dot(p1.astype(bf16), w2b_ref[...],
                preferred_element_type=jnp.float32) + b2_ref[...], 0.0)

    # MaxPool1d(2): even half vs odd half (384 = 3 vregs, aligned).
    p2 = jnp.maximum(c2[:, :384], c2[:, 384:])                  # (TB, 384)

    # Dropout(0.2): inference-mode identity (no mask).
    # Flatten + Linear(384,512) + ReLU: torch channel-major flatten order is
    # already baked into wl1's row permutation.
    h = jnp.maximum(
        jnp.dot(p2.astype(bf16), wl1_ref[...],
                preferred_element_type=jnp.float32) + bl1_ref[...], 0.0)
    # Linear(512,128) + ReLU
    h = jnp.maximum(
        jnp.dot(h.astype(bf16), wl2_ref[...],
                preferred_element_type=jnp.float32) + bl2_ref[...], 0.0)
    # Linear(128,64) + ReLU, output padded to 128 lanes (lane-dense).
    h = jnp.maximum(
        jnp.dot(h.astype(bf16), wl3_ref[...],
                preferred_element_type=jnp.float32) + bl3_ref[...], 0.0)
    # Linear(64,2) + Sigmoid, padded to 128x128 (zero rows/cols) -> full
    # lane-dense (TB, 128) store; wrapper slices [:, :2].
    z = jnp.dot(h.astype(bf16), wl4_ref[...],
                preferred_element_type=jnp.float32) + bl4_ref[...]
    out_ref[...] = pl.reciprocal(1.0 + jnp.exp(-z), approx=True)


# ---------------------------------------------------------------------------
# Batch-tile selection: minimize padding waste, prefer >=2 grid steps (v7x
# megacore), then the largest tile (per-step overhead amortization).
# ---------------------------------------------------------------------------
def _choose_batch_tile(B, tile_b):
    B8 = -(-B // 8) * 8
    cands = [t for t in (128, 256, 512, 1024) if t <= tile_b]
    if not cands:
        cands = [max(8, tile_b - tile_b % 8)]
    if B8 <= cands[0]:
        return B8                       # tiny batch: no padding beyond 8-align
    best_key, best_t = None, cands[0]
    for t in cands:
        Bp = -(-B8 // t) * t
        steps = Bp // t
        key = (Bp, 0 if steps >= 2 else 1, -t)
        if best_key is None or key < best_key:
            best_key, best_t = key, t
    return best_t


# ---------------------------------------------------------------------------
# Wrapper: batch-tiled "parallel" grid, VMEM-resident weights, lane-dense out.
# ---------------------------------------------------------------------------
@functools.partial(jax.jit, static_argnames=("tile_b",))
def cnn1d_forward(x, kparams, *, tile_b=1024):
    x2 = x.reshape(-1, 30).astype(jnp.float32)    # torch: input.reshape(-1, 1, 30)
    B = x2.shape[0]
    TB = _choose_batch_tile(B, tile_b)
    Bp = -(-B // TB) * TB
    if Bp != B:
        x2 = jnp.pad(x2, ((0, Bp - B), (0, 0)))

    weight_specs = [pl.BlockSpec(p.shape, lambda i: (0, 0)) for p in kparams]

    flops_per_row = 2 * (30 * 1024 + 512 * 768 + 384 * 512
                         + 512 * 128 + 128 * 128 + 128 * 128)
    weight_bytes = sum(int(p.size) * p.dtype.itemsize for p in kparams)
    cost = pl.CostEstimate(
        flops=flops_per_row * Bp,
        transcendentals=128 * Bp,
        bytes_accessed=Bp * 30 * 4 + Bp * 128 * 4 + weight_bytes)

    out = pl.pallas_call(
        cnn1d_kernel,
        out_shape=jax.ShapeDtypeStruct((Bp, 128), jnp.float32),
        grid=(Bp // TB,),
        in_specs=[pl.BlockSpec((TB, 30), lambda i: (i, 0))] + weight_specs,
        out_specs=pl.BlockSpec((TB, 128), lambda i: (i, 0)),
        compiler_params=pltpu.CompilerParams(
            dimension_semantics=("parallel",),
            vmem_limit_bytes=48 * 1024 * 1024),   # > v5e 16 MiB default, < v7x 64 MiB phys
        cost_estimate=cost,
    )(x2, *kparams)
    return out[:B, :2]


# ---------------------------------------------------------------------------
# Parameters: torch-shaped init + host-side packing into kernel layouts.
# ---------------------------------------------------------------------------
def init_torch_params(key):
    """Deterministic synthetic parameters with the PyTorch module's shapes."""
    ks = jax.random.split(key, 12)
    nrm = lambda k, s, sc: jax.random.normal(k, s, jnp.float32) * sc
    w1 = nrm(ks[0], (32, 1, 3), 0.3)       # Conv1d(1, 32, 3).weight
    b1 = nrm(ks[1], (32,), 0.1)
    w2 = nrm(ks[2], (64, 32, 3), 0.1)      # Conv1d(32, 64, 3).weight
    b2 = nrm(ks[3], (64,), 0.1)
    wl1 = nrm(ks[4], (512, 384), 0.05)     # Linear(384, 512).weight (out, in)
    bl1 = nrm(ks[5], (512,), 0.05)
    wl2 = nrm(ks[6], (128, 512), 0.05)
    bl2 = nrm(ks[7], (128,), 0.05)
    wl3 = nrm(ks[8], (64, 128), 0.1)
    bl3 = nrm(ks[9], (64,), 0.1)
    wl4 = nrm(ks[10], (2, 64), 0.1)
    bl4 = nrm(ks[11], (2,), 0.1)
    return (w1, b1, w2, b2, wl1, bl1, wl2, bl2, wl3, bl3, wl4, bl4)


def pack_params(tparams):
    """Build banded / permuted / padded kernel weights on the host (numpy)."""
    (w1, b1, w2, b2, wl1, bl1, wl2, bl2, wl3, bl3, wl4, bl4) = [
        np.asarray(p, np.float32) for p in tparams]

    # Conv1 banded weight: (30, 1024). Column layout: even conv1 times packed
    # in lanes [0,512) as [pooled_t*32 + ch], odd times in [512,1024);
    # lanes 448..511 / 960..1023 are zero padding.
    W1b = np.zeros((30, 1024), np.float32)
    b1t = np.zeros((1, 1024), np.float32)
    for half, parity in ((0, 0), (512, 1)):
        for tp in range(14):
            t1 = 2 * tp + parity                      # conv1 output time 0..27
            col = half + tp * 32
            for k in range(3):
                W1b[t1 + k, col:col + 32] = w1[:, 0, k]
            b1t[0, col:col + 32] = b1

    # Conv2 banded weight: (512, 768). Rows follow p1's lane layout
    # (pooled_t*32 + in_ch, rows 448..511 zero); columns pack even conv2 times
    # in [0,384) and odd in [384,768) as [pool2_t*64 + out_ch].
    W2b = np.zeros((512, 768), np.float32)
    b2t = np.zeros((1, 768), np.float32)
    for half, parity in ((0, 0), (384, 1)):
        for tq in range(6):
            t2 = 2 * tq + parity                      # conv2 output time 0..11
            col = half + tq * 64
            for k in range(3):
                tp_in = t2 + k                        # stage-1 pooled time 0..13
                W2b[tp_in * 32:(tp_in + 1) * 32, col:col + 64] = w2[:, :, k].T
            b2t[0, col:col + 64] = b2

    # Linear(384,512): kernel p2 lane = pooled_t*64 + ch, torch flatten
    # feature = ch*6 + pooled_t  ->  permute rows accordingly.
    wl1_k = wl1.T.reshape(64, 6, 512).transpose(1, 0, 2).reshape(384, 512)
    bl1_k = bl1.reshape(1, 512)
    wl2_k, bl2_k = wl2.T.copy(), bl2.reshape(1, 128)

    # Linear(128,64) padded to 128 output lanes (zero cols, zero bias pad) and
    # Linear(64,2) padded to (128,128) (zero input rows, 2 live output cols):
    # exact (ReLU(0)=0 feeds zero rows), keeps every intermediate lane-dense.
    wl3_k = np.zeros((128, 128), np.float32)
    wl3_k[:, :64] = wl3.T
    bl3_k = np.zeros((1, 128), np.float32)
    bl3_k[0, :64] = bl3
    wl4_k = np.zeros((128, 128), np.float32)
    wl4_k[:64, :2] = wl4.T
    bl4_k = np.zeros((1, 128), np.float32)
    bl4_k[0, :2] = bl4

    # bf16 MXU operands for all weights; biases stay f32 (post-accumulation add).
    weights = [jnp.asarray(w, jnp.bfloat16)
               for w in (W1b, W2b, wl1_k, wl2_k, wl3_k, wl4_k)]
    biases = [jnp.asarray(b, jnp.float32)
              for b in (b1t, b2t, bl1_k, bl2_k, bl3_k, bl4_k)]
    (W1b, W2b, wl1_k, wl2_k, wl3_k, wl4_k) = weights
    (b1t, b2t, bl1_k, bl2_k, bl3_k, bl4_k) = biases
    return (W1b, b1t, W2b, b2t, wl1_k, bl1_k,
            wl2_k, bl2_k, wl3_k, bl3_k, wl4_k, bl4_k)


# ---------------------------------------------------------------------------
# Plain-JAX reference matching the PyTorch forward semantics (f32, torch layouts).
# ---------------------------------------------------------------------------
def cnn1d_reference(x, tparams):
    (w1, b1, w2, b2, wl1, bl1, wl2, bl2, wl3, bl3, wl4, bl4) = tparams
    x = x.reshape(-1, 30).astype(jnp.float32)
    B = x.shape[0]
    c1 = jnp.stack([x[:, t:t + 3] @ w1[:, 0, :].T for t in range(28)], axis=2)
    c1 = jnp.maximum(c1 + b1[None, :, None], 0.0)               # (B, 32, 28)
    p1 = jnp.max(c1.reshape(B, 32, 14, 2), axis=3)              # (B, 32, 14)
    c2 = jnp.stack([jnp.einsum('bik,oik->bo', p1[:, :, t:t + 3], w2)
                    for t in range(12)], axis=2)
    c2 = jnp.maximum(c2 + b2[None, :, None], 0.0)               # (B, 64, 12)
    p2 = jnp.max(c2.reshape(B, 64, 6, 2), axis=3)               # (B, 64, 6)
    flat = p2.reshape(B, 384)                                   # torch channel-major flatten
    h = jnp.maximum(flat @ wl1.T + bl1, 0.0)
    h = jnp.maximum(h @ wl2.T + bl2, 0.0)
    h = jnp.maximum(h @ wl3.T + bl3, 0.0)
    return jax.nn.sigmoid(h @ wl4.T + bl4)


if __name__ == "__main__":
    key = jax.random.PRNGKey(0)
    k_param, k_x = jax.random.split(key)
    tparams = init_torch_params(k_param)
    kparams = pack_params(tparams)
    x = jax.random.normal(k_x, (8, 30), jnp.float32)   # reshapes to (8, 1, 30) in torch

    out = jax.block_until_ready(cnn1d_forward(x, kparams))
    assert out.shape == (8, 2) and bool(jnp.all(jnp.isfinite(out)))

    # Kernel uses bf16 matmul operands (f32 accumulation) + approx reciprocal,
    # so compare against the f32 reference at a bf16-appropriate tolerance.
    ref = jax.block_until_ready(cnn1d_reference(x, tparams))
    np.testing.assert_allclose(np.asarray(out), np.asarray(ref), atol=2e-2, rtol=2e-2)

    print("KERNEL_OK")
</pallas_src>

<mosaic_0001>
module attributes {stable_mosaic.version = 11 : i64} {
  func.func @cnn1d_kernel(%arg0: i32, %arg1: memref<8x30xf32, #tpu.memory_space<vmem>>, %arg2: memref<30x1024xbf16, #tpu.memory_space<vmem>>, %arg3: memref<1x1024xf32, #tpu.memory_space<vmem>>, %arg4: memref<512x768xbf16, #tpu.memory_space<vmem>>, %arg5: memref<1x768xf32, #tpu.memory_space<vmem>>, %arg6: memref<384x512xbf16, #tpu.memory_space<vmem>>, %arg7: memref<1x512xf32, #tpu.memory_space<vmem>>, %arg8: memref<512x128xbf16, #tpu.memory_space<vmem>>, %arg9: memref<1x128xf32, #tpu.memory_space<vmem>>, %arg10: memref<128x128xbf16, #tpu.memory_space<vmem>>, %arg11: memref<1x128xf32, #tpu.memory_space<vmem>>, %arg12: memref<128x128xbf16, #tpu.memory_space<vmem>>, %arg13: memref<1x128xf32, #tpu.memory_space<vmem>>, %arg14: memref<8x128xf32, #tpu.memory_space<vmem>>) attributes {dimension_semantics = [#tpu.dimension_semantics<parallel>], iteration_bounds = array<i64: 1>, scalar_prefetch = 0 : i64, scratch_operands = 0 : i64, tpu.core_type = #tpu.core_type<tc>, window_params = [{transform_indices = @transform_0, window_bounds = array<i64: 8, 30>}, {pipeline_mode = #tpu.pipeline_mode<synchronous>, transform_indices = @transform_1, window_bounds = array<i64: 30, 1024>}, {pipeline_mode = #tpu.pipeline_mode<synchronous>, transform_indices = @transform_2, window_bounds = array<i64: 1, 1024>}, {pipeline_mode = #tpu.pipeline_mode<synchronous>, transform_indices = @transform_3, window_bounds = array<i64: 512, 768>}, {pipeline_mode = #tpu.pipeline_mode<synchronous>, transform_indices = @transform_4, window_bounds = array<i64: 1, 768>}, {pipeline_mode = #tpu.pipeline_mode<synchronous>, transform_indices = @transform_5, window_bounds = array<i64: 384, 512>}, {pipeline_mode = #tpu.pipeline_mode<synchronous>, transform_indices = @transform_6, window_bounds = array<i64: 1, 512>}, {pipeline_mode = #tpu.pipeline_mode<synchronous>, transform_indices = @transform_7, window_bounds = array<i64: 512, 128>}, {pipeline_mode = #tpu.pipeline_mode<synchronous>, transform_indices = @transform_8, window_bounds = array<i64: 1, 128>}, {pipeline_mode = #tpu.pipeline_mode<synchronous>, transform_indices = @transform_9, window_bounds = array<i64: 128, 128>}, {pipeline_mode = #tpu.pipeline_mode<synchronous>, transform_indices = @transform_10, window_bounds = array<i64: 1, 128>}, {pipeline_mode = #tpu.pipeline_mode<synchronous>, transform_indices = @transform_11, window_bounds = array<i64: 128, 128>}, {pipeline_mode = #tpu.pipeline_mode<synchronous>, transform_indices = @transform_12, window_bounds = array<i64: 1, 128>}, {transform_indices = @transform_13, window_bounds = array<i64: 8, 128>}]} {
    %c0 = arith.constant 0 : index
    %c0_0 = arith.constant 0 : index
    %0 = vector.load %arg1[%c0, %c0_0] : memref<8x30xf32, #tpu.memory_space<vmem>>, vector<8x30xf32>
    %1 = arith.truncf %0 : vector<8x30xf32> to vector<8x30xbf16>
    %c0_1 = arith.constant 0 : index
    %c0_2 = arith.constant 0 : index
    %2 = vector.load %arg2[%c0_1, %c0_2] : memref<30x1024xbf16, #tpu.memory_space<vmem>>, vector<30x1024xbf16>
    %cst = arith.constant dense<0.000000e+00> : vector<8x1024xf32>
    %3 = tpu.matmul %1, %2, %cst {dimension_numbers = #tpu.dot_dimension_numbers<[1], [0], [0], [1], [0, 0, 1, 1], [], []>} : vector<8x30xbf16>, vector<30x1024xbf16>, vector<8x1024xf32> -> vector<8x1024xf32>
    %c0_3 = arith.constant 0 : index
    %c0_4 = arith.constant 0 : index
    %4 = vector.load %arg3[%c0_3, %c0_4] : memref<1x1024xf32, #tpu.memory_space<vmem>>, vector<1x1024xf32>
    %5 = vector.broadcast %4 : vector<1x1024xf32> to vector<8x1024xf32>
    %6 = arith.addf %3, %5 : vector<8x1024xf32>
    %cst_5 = arith.constant 0.000000e+00 : f32
    %7 = vector.broadcast %cst_5 : f32 to vector<8x1024xf32>
    %8 = arith.maximumf %6, %7 : vector<8x1024xf32>
    %9 = vector.extract_strided_slice %8 {offsets = [0, 0], sizes = [8, 512], strides = [1, 1]} : vector<8x1024xf32> to vector<8x512xf32>
    %10 = vector.extract_strided_slice %8 {offsets = [0, 512], sizes = [8, 512], strides = [1, 1]} : vector<8x1024xf32> to vector<8x512xf32>
    %11 = arith.maximumf %9, %10 : vector<8x512xf32>
    %12 = arith.truncf %11 : vector<8x512xf32> to vector<8x512xbf16>
    %c0_6 = arith.constant 0 : index
    %c0_7 = arith.constant 0 : index
    %13 = vector.load %arg4[%c0_6, %c0_7] : memref<512x768xbf16, #tpu.memory_space<vmem>>, vector<512x768xbf16>
    %cst_8 = arith.constant dense<0.000000e+00> : vector<8x768xf32>
    %14 = tpu.matmul %12, %13, %cst_8 {dimension_numbers = #tpu.dot_dimension_numbers<[1], [0], [0], [1], [0, 0, 1, 1], [], []>} : vector<8x512xbf16>, vector<512x768xbf16>, vector<8x768xf32> -> vector<8x768xf32>
    %c0_9 = arith.constant 0 : index
    %c0_10 = arith.constant 0 : index
    %15 = vector.load %arg5[%c0_9, %c0_10] : memref<1x768xf32, #tpu.memory_space<vmem>>, vector<1x768xf32>
    %16 = vector.broadcast %15 : vector<1x768xf32> to vector<8x768xf32>
    %17 = arith.addf %14, %16 : vector<8x768xf32>
    %cst_11 = arith.constant 0.000000e+00 : f32
    %18 = vector.broadcast %cst_11 : f32 to vector<8x768xf32>
    %19 = arith.maximumf %17, %18 : vector<8x768xf32>
    %20 = vector.extract_strided_slice %19 {offsets = [0, 0], sizes = [8, 384], strides = [1, 1]} : vector<8x768xf32> to vector<8x384xf32>
    %21 = vector.extract_strided_slice %19 {offsets = [0, 384], sizes = [8, 384], strides = [1, 1]} : vector<8x768xf32> to vector<8x384xf32>
    %22 = arith.maximumf %20, %21 : vector<8x384xf32>
    %23 = arith.truncf %22 : vector<8x384xf32> to vector<8x384xbf16>
    %c0_12 = arith.constant 0 : index
    %c0_13 = arith.constant 0 : index
    %24 = vector.load %arg6[%c0_12, %c0_13] : memref<384x512xbf16, #tpu.memory_space<vmem>>, vector<384x512xbf16>
    %cst_14 = arith.constant dense<0.000000e+00> : vector<8x512xf32>
    %25 = tpu.matmul %23, %24, %cst_14 {dimension_numbers = #tpu.dot_dimension_numbers<[1], [0], [0], [1], [0, 0, 1, 1], [], []>} : vector<8x384xbf16>, vector<384x512xbf16>, vector<8x512xf32> -> vector<8x512xf32>
    %c0_15 = arith.constant 0 : index
    %c0_16 = arith.constant 0 : index
    %26 = vector.load %arg7[%c0_15, %c0_16] : memref<1x512xf32, #tpu.memory_space<vmem>>, vector<1x512xf32>
    %27 = vector.broadcast %26 : vector<1x512xf32> to vector<8x512xf32>
    %28 = arith.addf %25, %27 : vector<8x512xf32>
    %cst_17 = arith.constant 0.000000e+00 : f32
    %29 = vector.broadcast %cst_17 : f32 to vector<8x512xf32>
    %30 = arith.maximumf %28, %29 : vector<8x512xf32>
    %31 = arith.truncf %30 : vector<8x512xf32> to vector<8x512xbf16>
    %c0_18 = arith.constant 0 : index
    %c0_19 = arith.constant 0 : index
    %32 = vector.load %arg8[%c0_18, %c0_19] : memref<512x128xbf16, #tpu.memory_space<vmem>>, vector<512x128xbf16>
    %cst_20 = arith.constant dense<0.000000e+00> : vector<8x128xf32>
    %33 = tpu.matmul %31, %32, %cst_20 {dimension_numbers = #tpu.dot_dimension_numbers<[1], [0], [0], [1], [0, 0, 1, 1], [], []>} : vector<8x512xbf16>, vector<512x128xbf16>, vector<8x128xf32> -> vector<8x128xf32>
    %c0_21 = arith.constant 0 : index
    %c0_22 = arith.constant 0 : index
    %34 = vector.load %arg9[%c0_21, %c0_22] : memref<1x128xf32, #tpu.memory_space<vmem>>, vector<1x128xf32>
    %35 = vector.broadcast %34 : vector<1x128xf32> to vector<8x128xf32>
    %36 = arith.addf %33, %35 : vector<8x128xf32>
    %cst_23 = arith.constant 0.000000e+00 : f32
    %37 = vector.broadcast %cst_23 : f32 to vector<8x128xf32>
    %38 = arith.maximumf %36, %37 : vector<8x128xf32>
    %39 = arith.truncf %38 : vector<8x128xf32> to vector<8x128xbf16>
    %c0_24 = arith.constant 0 : index
    %c0_25 = arith.constant 0 : index
    %40 = vector.load %arg10[%c0_24, %c0_25] : memref<128x128xbf16, #tpu.memory_space<vmem>>, vector<128x128xbf16>
    %cst_26 = arith.constant dense<0.000000e+00> : vector<8x128xf32>
    %41 = tpu.matmul %39, %40, %cst_26 {dimension_numbers = #tpu.dot_dimension_numbers<[1], [0], [0], [1], [0, 0, 1, 1], [], []>} : vector<8x128xbf16>, vector<128x128xbf16>, vector<8x128xf32> -> vector<8x128xf32>
    %c0_27 = arith.constant 0 : index
    %c0_28 = arith.constant 0 : index
    %42 = vector.load %arg11[%c0_27, %c0_28] : memref<1x128xf32, #tpu.memory_space<vmem>>, vector<1x128xf32>
    %43 = vector.broadcast %42 : vector<1x128xf32> to vector<8x128xf32>
    %44 = arith.addf %41, %43 : vector<8x128xf32>
    %cst_29 = arith.constant 0.000000e+00 : f32
    %45 = vector.broadcast %cst_29 : f32 to vector<8x128xf32>
    %46 = arith.maximumf %44, %45 : vector<8x128xf32>
    %47 = arith.truncf %46 : vector<8x128xf32> to vector<8x128xbf16>
    %c0_30 = arith.constant 0 : index
    %c0_31 = arith.constant 0 : index
    %48 = vector.load %arg12[%c0_30, %c0_31] : memref<128x128xbf16, #tpu.memory_space<vmem>>, vector<128x128xbf16>
    %cst_32 = arith.constant dense<0.000000e+00> : vector<8x128xf32>
    %49 = tpu.matmul %47, %48, %cst_32 {dimension_numbers = #tpu.dot_dimension_numbers<[1], [0], [0], [1], [0, 0, 1, 1], [], []>} : vector<8x128xbf16>, vector<128x128xbf16>, vector<8x128xf32> -> vector<8x128xf32>
    %c0_33 = arith.constant 0 : index
    %c0_34 = arith.constant 0 : index
    %50 = vector.load %arg13[%c0_33, %c0_34] : memref<1x128xf32, #tpu.memory_space<vmem>>, vector<1x128xf32>
    %51 = vector.broadcast %50 : vector<1x128xf32> to vector<8x128xf32>
    %52 = arith.addf %49, %51 : vector<8x128xf32>
    %cst_35 = arith.constant 0.000000e+00 : f32
    %53 = vector.broadcast %cst_35 : f32 to vector<8x128xf32>
    %54 = arith.subf %53, %52 : vector<8x128xf32>
    %55 = math.exp %54 : vector<8x128xf32>
    %cst_36 = arith.constant 1.000000e+00 : f32
    %56 = vector.broadcast %cst_36 : f32 to vector<8x128xf32>
    %57 = arith.addf %56, %55 : vector<8x128xf32>
    %58 = tpu.reciprocal %57 {approx = true} : vector<8x128xf32> -> vector<8x128xf32>
    %c0_37 = arith.constant 0 : index
    %c0_38 = arith.constant 0 : index
    %59 = vector.load %arg14[%c0_37, %c0_38] : memref<8x128xf32, #tpu.memory_space<vmem>>, vector<8x128xf32>
    tpu.vector_store %arg14[%c0_37, %c0_38], %58 {strides = array<i32>} : memref<8x128xf32, #tpu.memory_space<vmem>>, vector<8x128xf32>,
    return
  }
  func.func @transform_0(%arg0: i32) -> (i32, i32) {
    %c0_i32 = arith.constant 0 : i32
    %c0_i32_0 = arith.constant 0 : i32
    return %arg0, %c0_i32 : i32, i32
  }
  func.func @transform_1(%arg0: i32) -> (i32, i32) {
    %c0_i32 = arith.constant 0 : i32
    %c0_i32_0 = arith.constant 0 : i32
    %c0_i32_1 = arith.constant 0 : i32
    return %c0_i32, %c0_i32_0 : i32, i32
  }
  func.func @transform_2(%arg0: i32) -> (i32, i32) {
    %c0_i32 = arith.constant 0 : i32
    %c0_i32_0 = arith.constant 0 : i32
    %c0_i32_1 = arith.constant 0 : i32
    return %c0_i32, %c0_i32_0 : i32, i32
  }
  func.func @transform_3(%arg0: i32) -> (i32, i32) {
    %c0_i32 = arith.constant 0 : i32
    %c0_i32_0 = arith.constant 0 : i32
    %c0_i32_1 = arith.constant 0 : i32
    return %c0_i32, %c0_i32_0 : i32, i32
  }
  func.func @transform_4(%arg0: i32) -> (i32, i32) {
    %c0_i32 = arith.constant 0 : i32
    %c0_i32_0 = arith.constant 0 : i32
    %c0_i32_1 = arith.constant 0 : i32
    return %c0_i32, %c0_i32_0 : i32, i32
  }
  func.func @transform_5(%arg0: i32) -> (i32, i32) {
    %c0_i32 = arith.constant 0 : i32
    %c0_i32_0 = arith.constant 0 : i32
    %c0_i32_1 = arith.constant 0 : i32
    return %c0_i32, %c0_i32_0 : i32, i32
  }
  func.func @transform_6(%arg0: i32) -> (i32, i32) {
    %c0_i32 = arith.constant 0 : i32
    %c0_i32_0 = arith.constant 0 : i32
    %c0_i32_1 = arith.constant 0 : i32
    return %c0_i32, %c0_i32_0 : i32, i32
  }
  func.func @transform_7(%arg0: i32) -> (i32, i32) {
    %c0_i32 = arith.constant 0 : i32
    %c0_i32_0 = arith.constant 0 : i32
    %c0_i32_1 = arith.constant 0 : i32
    return %c0_i32, %c0_i32_0 : i32, i32
  }
  func.func @transform_8(%arg0: i32) -> (i32, i32) {
    %c0_i32 = arith.constant 0 : i32
    %c0_i32_0 = arith.constant 0 : i32
    %c0_i32_1 = arith.constant 0 : i32
    return %c0_i32, %c0_i32_0 : i32, i32
  }
  func.func @transform_9(%arg0: i32) -> (i32, i32) {
    %c0_i32 = arith.constant 0 : i32
    %c0_i32_0 = arith.constant 0 : i32
    %c0_i32_1 = arith.constant 0 : i32
    return %c0_i32, %c0_i32_0 : i32, i32
  }
  func.func @transform_10(%arg0: i32) -> (i32, i32) {
    %c0_i32 = arith.constant 0 : i32
    %c0_i32_0 = arith.constant 0 : i32
    %c0_i32_1 = arith.constant 0 : i32
    return %c0_i32, %c0_i32_0 : i32, i32
  }
  func.func @transform_11(%arg0: i32) -> (i32, i32) {
    %c0_i32 = arith.constant 0 : i32
    %c0_i32_0 = arith.constant 0 : i32
    %c0_i32_1 = arith.constant 0 : i32
    return %c0_i32, %c0_i32_0 : i32, i32
  }
  func.func @transform_12(%arg0: i32) -> (i32, i32) {
    %c0_i32 = arith.constant 0 : i32
    %c0_i32_0 = arith.constant 0 : i32
    %c0_i32_1 = arith.constant 0 : i32
    return %c0_i32, %c0_i32_0 : i32, i32
  }
  func.func @transform_13(%arg0: i32) -> (i32, i32) {
    %c0_i32 = arith.constant 0 : i32
    %c0_i32_0 = arith.constant 0 : i32
    return %arg0, %c0_i32 : i32, i32
  }
}

</mosaic_0001>

<bundles_post_ra>
// kernel: cnn1d_forward.1
= control target key start
LH: loop header
LB: loop body
LE: loop exit
PB: predicated region body
PF: predicated region fallthrough
CT: control target
= control target key end

     0   :  { %18 = vsyncpa [#allocation3], 0  ;;  %s5446_s0 = inlined_call_operand.hbm [shape: f32[8,30], index: 0, kind: input, shape index: {}]   ;;  %s5447_s1 = inlined_call_operand.hbm [shape: bf16[30,1024], index: 1, kind: input, shape index: {}]   ;;  %s5448_s2 = inlined_call_operand.hbm [shape: f32[1,1024], index: 2, kind: input, shape index: {}]   ;;  %s5449_s3 = inlined_call_operand.hbm [shape: bf16[512,768], index: 3, kind: input, shape index: {}]   ;;  %s5450_s4 = inlined_call_operand.hbm [shape: f32[1,768], index: 4, kind: input, shape index: {}]   ;;  %s5451_s5 = inlined_call_operand.hbm [shape: bf16[384,512], index: 5, kind: input, shape index: {}]   ;;  %s5452_s6 = inlined_call_operand.vmem [shape: f32[1,512], index: 6, kind: input, shape index: {}]   ;;  %s5453_s7 = inlined_call_operand.hbm [shape: bf16[512,128], index: 7, kind: input, shape index: {}]   ;;  %s5454_s8 = inlined_call_operand.vmem [shape: f32[1,128], index: 8, kind: input, shape index: {}]   ;;  %s5455_s9 = inlined_call_operand.hbm [shape: bf16[128,128], index: 9, kind: input, shape index: {}]   ;;  %s5456_s10 = inlined_call_operand.vmem [shape: f32[1,128], index: 10, kind: input, shape index: {}]   ;;  %s5457_s11 = inlined_call_operand.hbm [shape: bf16[128,128], index: 11, kind: input, shape index: {}]   ;;  %s5458_s12 = inlined_call_operand.vmem [shape: f32[1,128], index: 12, kind: input, shape index: {}]   ;;  %s5459_s13 = inlined_call_operand.vmem [shape: f32[8,128], index: 13, kind: output, shape index: {}]  }
   0x1   :  { %19 = vsyncpa [#allocation5], 0 }
   0x2   :  { %20 = vsyncpa [#allocation8], 0 }
   0x3   :  { %21 = vsyncpa [#allocation11], 0  ;;  %s38_s27 = sshll.u32 %s5447_s1, 4  ;;  %s39_s27 = int_to_ptr.hbm [resolvable:$true] %s38_s27 }
   0x4   :  { %22 = vsyncpa [#allocation14], 0  ;;  %s5187_s28 = smov [#allocation4]   ;;  %s62_s15 = sshll.u32 %s5449_s3, 4  ;;  %s63_s15 = int_to_ptr.hbm [resolvable:$true] %s62_s15 }
   0x5   :  { %s40_s29 = sshll.u32 %s5187_s28, 4  ;;  %s5188_s16 = smov 512   ;;  %s41_s29 = int_to_ptr.vmem [resolvable:$true] %s40_s29 }
   0x6   :  { %s5189_s17 = smov 32   ;;  %s5190_s18 = smov [#allocation7]  }
   0x7   :  { %46 = dma.hbm_to_vmem [thread:$0]  %s39_s27, 2048, %s41_s29, [#allocation5], %s5188_s16, %s5188_s16, %s5189_s17  }
   0x8   :  { %s64_s19 = sshll.u32 %s5190_s18, 4  ;;  %s5191_s20 = smov 384   ;;  %s65_s19 = int_to_ptr.vmem [resolvable:$true] %s64_s19 }
   0x9   :  { %s5192_s21 = smov 24   ;;  %s86_s23 = sshll.u32 %s5451_s5, 4  ;;  %s87_s23 = int_to_ptr.hbm [resolvable:$true] %s86_s23 }
   0xa   :  { %70 = dma.hbm_to_vmem [thread:$0]  %s63_s15, 24576, %s65_s19, [#allocation8], %s5191_s20, %s5191_s20, %s5192_s21  }
   0xb   :  { %s5193_s24 = smov [#allocation10]   ;;  %s5194_s26 = smov 256  }
   0xc   :  { %s88_s25 = sshll.u32 %s5193_s24, 4  ;;  %s5195_s3 = smov 16   ;;  %s89_s25 = int_to_ptr.vmem [resolvable:$true] %s88_s25 }
   0xd   :  { %94 = dma.hbm_to_vmem [thread:$0]  %s87_s23, 12288, %s89_s25, [#allocation11], %s5194_s26, %s5194_s26, %s5195_s3  }
   0xe   :  { %s116_s29 = sshll.u32 %s5455_s9, 4  ;;  %s5196_s30 = smov [#allocation13]   ;;  %s117_s29 = int_to_ptr.hbm [resolvable:$true] %s116_s29 }
   0xf   :  { %s118_s14 = sshll.u32 %s5196_s30, 4  ;;  %s28_s17 = sshll.u32 %s5446_s0, 4  ;;  %s119_s14 = int_to_ptr.vmem [resolvable:$true] %s118_s14  ;;  %s29_s17 = int_to_ptr.hbm [resolvable:$true] %s28_s17 }
  0x10   :  { %s5197_s5 = smov 64   ;;  %s5198_s18 = smov 4  }
  0x11   :  { %124 = dma.hbm_to_vmem [thread:$0]  %s117_s29, 1024, %s119_s14, [#allocation14], %s5197_s5, %s5197_s5, %s5198_s18  }
  0x12   :  { %s52_s21 = sshll.u32 %s5448_s2, 4  ;;  %s5199_s9 = smov [#allocation2]   ;;  %s53_s21 = int_to_ptr.hbm [resolvable:$true] %s52_s21 }
  0x13   :  { %s30_s1 = sshll.u32 %s5199_s9, 4  ;;  %s5200_s22 = smov [#allocation6]   ;;  %s31_s1 = int_to_ptr.vmem [resolvable:$true] %s30_s1 }
  0x14   :  { %33 = dma.hbm_to_vmem [thread:$0]  %s29_s17, 128, %s31_s1, [#allocation3]  }
  0x15   :  { %s54_s23 = sshll.u32 %s5200_s22, 4  ;;  %s76_s25 = sshll.u32 %s5450_s4, 4  ;;  %s55_s23 = int_to_ptr.vmem [resolvable:$true] %s54_s23  ;;  %s77_s25 = int_to_ptr.hbm [resolvable:$true] %s76_s25 }
  0x16   :  { %57 = dma.hbm_to_vmem [thread:$0]  %s53_s21, 128, %s55_s23, [#allocation5]  }
  0x17   :  { %s101_s28 = sshll.u32 %s5453_s7, 4  ;;  %s5201_s27 = smov [#allocation9]   ;;  %s102_s28 = int_to_ptr.hbm [resolvable:$true] %s101_s28 }
  0x18   :  { %s78_s2 = sshll.u32 %s5201_s27, 4  ;;  %s5202_s29 = smov [#allocation12]   ;;  %s79_s2 = int_to_ptr.vmem [resolvable:$true] %s78_s2 }
  0x19   :  { %81 = dma.hbm_to_vmem [thread:$0]  %s77_s25, 96, %s79_s2, [#allocation8]  }
  0x1a   :  { %s103_s30 = sshll.u32 %s5202_s29, 4  ;;  %s131_s15 = sshll.u32 %s5457_s11, 4  ;;  %s104_s30 = int_to_ptr.vmem [resolvable:$true] %s103_s30  ;;  %s132_s15 = int_to_ptr.hbm [resolvable:$true] %s131_s15 }
  0x1b   :  { %109 = dma.hbm_to_vmem [thread:$0]  %s102_s28, 4096, %s104_s30, [#allocation11], %s5197_s5, %s5197_s5, %s5198_s18  }
  0x1c   :  { %s5203_s4 = smov [#allocation15]  }
  0x1d   :  { %s133_s17 = sshll.u32 %s5203_s4, 4  ;;  %s134_s17 = int_to_ptr.vmem [resolvable:$true] %s133_s17 }
  0x1e   :  { %139 = dma.hbm_to_vmem [thread:$0]  %s132_s15, 1024, %s134_s17, [#allocation14], %s5197_s5, %s5197_s5, %s5198_s18  }
  0x1f   :  { %5177 = dma.done.wait [#allocation3], 128  }
  0x20   :  { %5178 = vsyncadd [#allocation3], 4294967168 }
  0x21   :  { %5179 = dma.done.wait [#allocation5], 2176  }
  0x22   :  { %5180 = vsyncadd [#allocation5], 4294965120 }
  0x23   :  { %5181 = dma.done.wait [#allocation8], 24672  }
  0x24   :  { %5182 = vsyncadd [#allocation8], 4294942624 }
  0x25   :  { %5183 = dma.done.wait [#allocation11], 16384  }
  0x26   :  { %5184 = vsyncadd [#allocation11], 4294950912 }
  0x27   :  { %5185 = dma.done.wait [#allocation14], 2048  }
  0x28   :  { %5186 = vsyncadd [#allocation14], 4294965248  ;;  %vm291_vm0 = vcmask 1046528   ;;  %v3203_v0 = vld [vmem:[#allocation4 + $0x40] sm:$0xf]  ;;  %v179_v18 = vld [vmem:[#allocation2] sm:$0xff] }
  0x29   :  { %v4597_v1 = vld [vmem:[#allocation4 + $0x5c] sm:$0x70]  ;;  %v4593_v2 = vld [vmem:[#allocation4 + $0x44] sm:$0xf]  ;;  %v3219_v10 = vld [vmem:[#allocation4 + $0x50] sm:$0xf]  ;;  %v5314_v29 = vpack.c.bf16 %v179_v18, %v179_v18 }
  0x2a   :  { %v3204_v3 = vor.u32 %v4597_v1, %v3203_v0  ;;  %v3205_v4 = vld [vmem:[#allocation4 + $0x60] sm:$0x70]  ;;  %v3171_v5 = vld [vmem:[#allocation4] sm:$0xf]  ;;  %v4599_v12 = vld [vmem:[#allocation4 + $0x6c] sm:$0x70] }
  0x2b   :  { %v4589_v6 = vld [vmem:[#allocation4 + $0x1c] sm:$0xf0]  ;;  %v3208_v7 = vor.u32 %v4593_v2, %v3205_v4  ;;  %v4585_v8 = vld [vmem:[#allocation4 + $0x4] sm:$0xf]  ;;  %v4595_v13 = vld [vmem:[#allocation4 + $0x54] sm:$0xf]  ;;  %v3220_v16 = vor.u32 %v4599_v12, %v3219_v10 }
  0x2c   :  { %v3173_v9 = vld [vmem:[#allocation4 + $0x20] sm:$0xf0]  ;;  %v293_v11 = vsel %vm291_vm0, %v3204_v3, 0  ;;  %v3172_v15 = vor.u32 %v4589_v6, %v3171_v5  ;;  %v3221_v17 = vld [vmem:[#allocation4 + $0x70] sm:$0x70]  ;;  %vm287_vm1 = vcmask 244736  }
  0x2d   :  { %322 = vmatpush.bf16.msra.mxu2 %v293_v11  ;;  %v296_v14 = vsel %vm291_vm0, %v3208_v7, 0  ;;  %v3187_v19 = vld [vmem:[#allocation4 + $0x10] sm:$0xf]  ;;  %v3176_v20 = vor.u32 %v4585_v8, %v3173_v9  ;;  %v3224_v21 = vor.u32 %v4595_v13, %v3221_v17  ;;  %v4587_v23 = vld [vmem:[#allocation4 + $0x14] sm:$0xf]  ;;  %v305_v25 = vsel %vm291_vm0, %v3220_v16, 0 }
  0x2e   :  { %335 = vmatpush.bf16.msra.mxu3 %v296_v14  ;;  %v4591_v22 = vld [vmem:[#allocation4 + $0x2c] sm:$0xf0]  ;;  %v3189_v24 = vld [vmem:[#allocation4 + $0x30] sm:$0xf0]  ;;  %v3211_v26 = vld [vmem:[#allocation4 + $0x48] sm:$0xf]  ;;  %374 = vmatpush.bf16.msra.mxu0 %v305_v25 }
  0x2f   :  { %v4598_v27 = vld [vmem:[#allocation4 + $0x64] sm:$0x70]  ;;  %v308_v28 = vsel %vm291_vm0, %v3224_v21, 0  ;;  %v3188_v30 = vor.u32 %v4591_v22, %v3187_v19  ;;  %v4594_v32 = vld [vmem:[#allocation4 + $0x4c] sm:$0xf]  ;;  %v3192_v34 = vor.u32 %v4587_v23, %v3189_v24 }
  0x30   :  { %v3212_v31 = vor.u32 %v4598_v27, %v3211_v26  ;;  %v3213_v33 = vld [vmem:[#allocation4 + $0x68] sm:$0x70]  ;;  %387 = vmatpush.bf16.msra.mxu1 %v308_v28  ;;  %v3179_v36 = vld [vmem:[#allocation4 + $0x8] sm:$0xf]  ;;  %v3227_v41 = vld [vmem:[#allocation4 + $0x58] sm:$0xf] }
  0x31   :  { %323 = vmatpush.bf16.msra.mxu2 %v3172_v15  ;;  %v3216_v35 = vor.u32 %v4594_v32, %v3213_v33  ;;  %v4590_v37 = vld [vmem:[#allocation4 + $0x24] sm:$0xf0]  ;;  %v4586_v38 = vld [vmem:[#allocation4 + $0xc] sm:$0xf]  ;;  %v4600_v44 = vld [vmem:[#allocation4 + $0x74] sm:$0x70] }
  0x32   :  { %336 = vmatpush.bf16.msra.mxu3 %v3176_v20  ;;  %v299_v39 = vsel %vm291_vm0, %v3212_v31, 0  ;;  %v3181_v40 = vld [vmem:[#allocation4 + $0x28] sm:$0xf0]  ;;  %v3180_v43 = vor.u32 %v4590_v37, %v3179_v36  ;;  %v4596_v45 = vld [vmem:[#allocation4 + $0x5c] sm:$0xf]  ;;  %375 = vmatpush.bf16.msra.mxu0 %v3188_v30  ;;  %v3228_v46 = vor.u32 %v4600_v44, %v3227_v41 }
  0x33   :  { %v302_v42 = vsel %vm291_vm0, %v3216_v35, 0  ;;  %v3229_v47 = vld [vmem:[#allocation4 + $0x78] sm:$0x70]  ;;  %v3195_v49 = vld [vmem:[#allocation4 + $0x18] sm:$0xf]  ;;  %v3184_v52 = vor.u32 %v4586_v38, %v3181_v40 }
  0x34   :  { %3233 = vmatmul.msk.bf16.vlgmr.msra.gmra.mxu2 %vm287_vm1, %v5314_v29  ;;  %388 = vmatpush.bf16.msra.mxu1 %v3192_v34  ;;  %v3232_v48 = vor.u32 %v4596_v45, %v3229_v47  ;;  %v4592_v50 = vld [vmem:[#allocation4 + $0x34] sm:$0xf0]  ;;  %v311_v53 = vsel %vm291_vm0, %v3228_v46, 0  ;;  %v4588_v54 = vld [vmem:[#allocation4 + $0x1c] sm:$0xf] }
  0x35   :  { %348 = vmatpush.bf16.msrb.mxu2 %v299_v39  ;;  %3234 = vmatmul.msk.bf16.vlgmr.msra.gmra.mxu3 %vm287_vm1, %v5314_v29  ;;  %v3411_v51 = vld [vmem:[#allocation7 + $0x150] sm:$0xf]  ;;  %v3197_v55 = vld [vmem:[#allocation4 + $0x38] sm:$0xf0]  ;;  %v4646_v56 = vld [vmem:[#allocation7 + $0x164] sm:$0xf0]  ;;  %v3196_v62 = vor.u32 %v4592_v50, %v3195_v49 }
  0x36   :  { %361 = vmatpush.bf16.msrb.mxu3 %v302_v42  ;;  %v3603_v57 = vld [vmem:[#allocation7 + $0x2d0] sm:$0xf]  ;;  %3237 = vmatmul.msk.bf16.vlgmr.msra.gmra.mxu0 %vm287_vm1, %v5314_v29  ;;  %v314_v58 = vsel %vm291_vm0, %v3232_v48, 0  ;;  %v3412_v59 = vor.u32 %v4646_v56, %v3411_v51  ;;  %v4694_v60 = vld [vmem:[#allocation7 + $0x2e4] sm:$0xf0]  ;;  %v3200_v7 = vor.u32 %v4588_v54, %v3197_v55 }
  0x37   :  { %v3387_v61 = vld [vmem:[#allocation7 + $0x120] sm:$0xf]  ;;  %3238 = vmatmul.msk.bf16.vlgmr.msra.gmra.mxu1 %vm287_vm1, %v5314_v29  ;;  %v3604_v63 = vor.u32 %v4694_v60, %v3603_v57  ;;  %v4640_v0 = vld [vmem:[#allocation7 + $0x134] sm:$0xf0]  ;;  %v3363_v5 = vld [vmem:[#allocation7 + $0xf0] sm:$0xf] }
  0x38   :  { %v3579_v1 = vld [vmem:[#allocation7 + $0x2a0] sm:$0xf]  ;;  %v4688_v2 = vld [vmem:[#allocation7 + $0x2b4] sm:$0xf0]  ;;  %1602 = vmatpush.bf16.msrb.mxu0 %v3412_v59  ;;  %v3388_v3 = vor.u32 %v4640_v0, %v3387_v61  ;;  %v4634_v6 = vld [vmem:[#allocation7 + $0x104] sm:$0xf0] }
  0x39   :  { %349 = vmatpush.bf16.msrb.mxu2 %v3180_v43  ;;  %1615 = vmatpush.bf16.msrb.mxu1 %v3604_v63  ;;  %v3580_v4 = vor.u32 %v4688_v2, %v3579_v1  ;;  %v3555_v8 = vld [vmem:[#allocation7 + $0x270] sm:$0xf]  ;;  %v4682_v9 = vld [vmem:[#allocation7 + $0x284] sm:$0xf0]  ;;  %v3364_v10 = vor.u32 %v4634_v6, %v3363_v5  ;;  %v3339_v12 = vld [vmem:[#allocation7 + $0xc0] sm:$0xf] }
  0x3a   :  { %362 = vmatpush.bf16.msrb.mxu3 %v3184_v52  ;;  %v3556_v11 = vor.u32 %v4682_v9, %v3555_v8  ;;  %v4628_v13 = vld [vmem:[#allocation7 + $0xd4] sm:$0xf0]  ;;  %v3531_v14 = vld [vmem:[#allocation7 + $0x240] sm:$0xf]  ;;  %v3315_v17 = vld [vmem:[#allocation7 + $0x90] sm:$0xf] }
  0x3b   :  { %v4676_v15 = vld [vmem:[#allocation7 + $0x254] sm:$0xf0]  ;;  %v3340_v16 = vor.u32 %v4628_v13, %v3339_v12  ;;  %v4622_v18 = vld [vmem:[#allocation7 + $0xa4] sm:$0xf0]  ;;  %v3507_v20 = vld [vmem:[#allocation7 + $0x210] sm:$0xf] }
  0x3c   :  { %1603 = vmatpush.bf16.msrb.mxu0 %v3388_v3  ;;  %v3532_v19 = vor.u32 %v4676_v15, %v3531_v14  ;;  %v3795_v21 = vld [vmem:[#allocation7 + $0x450] sm:$0xf]  ;;  %v4742_v22 = vld [vmem:[#allocation7 + $0x464] sm:$0xf0]  ;;  %v3316_v28 = vor.u32 %v4622_v18, %v3315_v17  ;;  %v3771_v30 = vld [vmem:[#allocation7 + $0x420] sm:$0xf] }
  0x3d   :  { %400 = vmatpush.bf16.msra.mxu2 %v311_v53  ;;  %1616 = vmatpush.bf16.msrb.mxu1 %v3580_v4  ;;  %v4670_v23 = vld [vmem:[#allocation7 + $0x224] sm:$0xf0]  ;;  %v3796_v24 = vor.u32 %v4742_v22, %v3795_v21  ;;  %v3987_v25 = vld [vmem:[#allocation7 + $0x5d0] sm:$0xf]  ;;  %v4736_v31 = vld [vmem:[#allocation7 + $0x434] sm:$0xf0] }
  0x3e   :  { %413 = vmatpush.bf16.msra.mxu3 %v314_v58  ;;  %v4790_v26 = vld [vmem:[#allocation7 + $0x5e4] sm:$0xf0]  ;;  %v3963_v32 = vld [vmem:[#allocation7 + $0x5a0] sm:$0xf]  ;;  %v3508_v33 = vor.u32 %v4670_v23, %v3507_v20  ;;  %v4616_v35 = vld [vmem:[#allocation7 + $0x74] sm:$0xf0]  ;;  %v3772_v36 = vor.u32 %v4736_v31, %v3771_v30 }
  0x3f   :  { %v3988_v27 = vor.u32 %v4790_v26, %v3987_v25  ;;  %v3291_v34 = vld [vmem:[#allocation7 + $0x60] sm:$0xf]  ;;  %v4784_v37 = vld [vmem:[#allocation7 + $0x5b4] sm:$0xf0]  ;;  %v3747_v41 = vld [vmem:[#allocation7 + $0x3f0] sm:$0xf] }
  0x40   :  { %1604 = vmatpush.bf16.msrb.mxu0 %v3364_v10  ;;  %v3483_v38 = vld [vmem:[#allocation7 + $0x1e0] sm:$0xf]  ;;  %v4664_v39 = vld [vmem:[#allocation7 + $0x1f4] sm:$0xf0]  ;;  %v3964_v40 = vor.u32 %v4784_v37, %v3963_v32  ;;  %v4730_v42 = vld [vmem:[#allocation7 + $0x404] sm:$0xf0]  ;;  %v3292_v45 = vor.u32 %v4616_v35, %v3291_v34 }
  0x41   :  { %401 = vmatpush.bf16.msra.mxu2 %v3196_v62  ;;  %1617 = vmatpush.bf16.msrb.mxu1 %v3556_v11  ;;  %v3939_v43 = vld [vmem:[#allocation7 + $0x570] sm:$0xf]  ;;  %v4778_v44 = vld [vmem:[#allocation7 + $0x584] sm:$0xf0]  ;;  %v3484_v46 = vor.u32 %v4664_v39, %v3483_v38  ;;  %v3748_v50 = vor.u32 %v4730_v42, %v3747_v41  ;;  %v3723_v53 = vld [vmem:[#allocation7 + $0x3c0] sm:$0xf] }
  0x42   :  { %414 = vmatpush.bf16.msra.mxu3 %v3200_v7  ;;  %v3267_v47 = vld [vmem:[#allocation7 + $0x30] sm:$0xf]  ;;  %v4610_v48 = vld [vmem:[#allocation7 + $0x44] sm:$0xf0]  ;;  %v3940_v52 = vor.u32 %v4778_v44, %v3939_v43  ;;  %v4724_v54 = vld [vmem:[#allocation7 + $0x3d4] sm:$0xf0] }
  0x43   :  { %v3459_v49 = vld [vmem:[#allocation7 + $0x1b0] sm:$0xf]  ;;  %v4658_v51 = vld [vmem:[#allocation7 + $0x1c4] sm:$0xf0]  ;;  %v3243_v55 = vld [vmem:[#allocation7] sm:$0xf]  ;;  %v3268_v58 = vor.u32 %v4610_v48, %v3267_v47  ;;  %v3724_v1 = vor.u32 %v4724_v54, %v3723_v53 }
  0x44   :  { %3235 = vmatmul.msk.bf16.vlgmr.msrb.gmra.mxu2 %vm287_vm1, %v5314_v29  ;;  %1605 = vmatpush.bf16.msrb.mxu0 %v3340_v16  ;;  %v3915_v56 = vld [vmem:[#allocation7 + $0x540] sm:$0xf]  ;;  %v4772_v57 = vld [vmem:[#allocation7 + $0x554] sm:$0xf0]  ;;  %v3460_v62 = vor.u32 %v4658_v51, %v3459_v49  ;;  %v4643_v63 = vld [vmem:[#allocation7 + $0x154] sm:$0xf] }
  0x45   :  { %3236 = vmatmul.msk.bf16.vlgmr.msrb.gmra.mxu3 %vm287_vm1, %v5314_v29  ;;  %1618 = vmatpush.bf16.msrb.mxu1 %v3532_v19  ;;  %v4604_v59 = vld [vmem:[#allocation7 + $0x14] sm:$0xf0]  ;;  %v3435_v60 = vld [vmem:[#allocation7 + $0x180] sm:$0xf]  ;;  %v3413_v0 = vld [vmem:[#allocation7 + $0x168] sm:$0xf0]  ;;  %v3916_v3 = vor.u32 %v4772_v57, %v3915_v56 }
  0x46   :  { %1628 = vmatpush.bf16.msrb.mxu2 %v3796_v24  ;;  %1641 = vmatpush.bf16.msrb.mxu3 %v3988_v27  ;;  %v4652_v61 = vld [vmem:[#allocation7 + $0x194] sm:$0xf0]  ;;  %v4691_v2 = vld [vmem:[#allocation7 + $0x2d4] sm:$0xf]  ;;  %v3605_v4 = vld [vmem:[#allocation7 + $0x2e8] sm:$0xf0]  ;;  %v3244_v7 = vor.u32 %v4604_v59, %v3243_v55  ;;  %v3416_v11 = vor.u32 %v4643_v63, %v3413_v0 }
  0x47   :  { %v3699_v5 = vld [vmem:[#allocation7 + $0x390] sm:$0xf]  ;;  %v4718_v6 = vld [vmem:[#allocation7 + $0x3a4] sm:$0xf0]  ;;  %v3436_v10 = vor.u32 %v4652_v61, %v3435_v60  ;;  %v3608_v12 = vor.u32 %v4691_v2, %v3605_v4  ;;  %v4637_v13 = vld [vmem:[#allocation7 + $0x124] sm:$0xf] }
  0x48   :  { %1606 = vmatpush.bf16.msrb.mxu0 %v3316_v28  ;;  %v3891_v8 = vld [vmem:[#allocation7 + $0x510] sm:$0xf]  ;;  %v4766_v9 = vld [vmem:[#allocation7 + $0x524] sm:$0xf0]  ;;  %v3389_v14 = vld [vmem:[#allocation7 + $0x138] sm:$0xf0]  ;;  %v3700_v15 = vor.u32 %v4718_v6, %v3699_v5 }
  0x49   :  { %1619 = vmatpush.bf16.msrb.mxu1 %v3508_v33  ;;  %v4685_v16 = vld [vmem:[#allocation7 + $0x2a4] sm:$0xf]  ;;  %v3581_v17 = vld [vmem:[#allocation7 + $0x2b8] sm:$0xf0]  ;;  %v3892_v18 = vor.u32 %v4766_v9, %v3891_v8  ;;  %v3392_v19 = vor.u32 %v4637_v13, %v3389_v14  ;;  %v4631_v21 = vld [vmem:[#allocation7 + $0xf4] sm:$0xf] }
  0x4a   :  { %1629 = vmatpush.bf16.msrb.mxu2 %v3772_v36  ;;  %1642 = vmatpush.bf16.msrb.mxu3 %v3964_v40  ;;  %v3584_v20 = vor.u32 %v4685_v16, %v3581_v17  ;;  %v3365_v22 = vld [vmem:[#allocation7 + $0x108] sm:$0xf0]  ;;  %v4679_v23 = vld [vmem:[#allocation7 + $0x274] sm:$0xf]  ;;  %v4625_v27 = vld [vmem:[#allocation7 + $0xc4] sm:$0xf] }
  0x4b   :  { %v3557_v24 = vld [vmem:[#allocation7 + $0x288] sm:$0xf0]  ;;  %v3368_v25 = vor.u32 %v4631_v21, %v3365_v22  ;;  %v3341_v28 = vld [vmem:[#allocation7 + $0xd8] sm:$0xf0]  ;;  %v4673_v30 = vld [vmem:[#allocation7 + $0x244] sm:$0xf] }
  0x4c   :  { %1607 = vmatpush.bf16.msrb.mxu0 %v3292_v45  ;;  %v3560_v26 = vor.u32 %v4679_v23, %v3557_v24  ;;  %v3344_v31 = vor.u32 %v4625_v27, %v3341_v28  ;;  %v4619_v33 = vld [vmem:[#allocation7 + $0x94] sm:$0xf]  ;;  %v3317_v34 = vld [vmem:[#allocation7 + $0xa8] sm:$0xf0]  ;;  %v4613_v39 = vld [vmem:[#allocation7 + $0x64] sm:$0xf] }
  0x4d   :  { %1620 = vmatpush.bf16.msrb.mxu1 %v3484_v46  ;;  %v4667_v35 = vld [vmem:[#allocation7 + $0x214] sm:$0xf]  ;;  %v3509_v36 = vld [vmem:[#allocation7 + $0x228] sm:$0xf0]  ;;  %v3320_v37 = vor.u32 %v4619_v33, %v3317_v34  ;;  %v3293_v40 = vld [vmem:[#allocation7 + $0x78] sm:$0xf0] }
  0x4e   :  { %1630 = vmatpush.bf16.msrb.mxu2 %v3748_v50  ;;  %1643 = vmatpush.bf16.msrb.mxu3 %v3940_v52  ;;  %v3512_v38 = vor.u32 %v4667_v35, %v3509_v36  ;;  %v4661_v41 = vld [vmem:[#allocation7 + $0x1e4] sm:$0xf]  ;;  %v3296_v42 = vor.u32 %v4613_v39, %v3293_v40  ;;  %v3485_v43 = vld [vmem:[#allocation7 + $0x1f8] sm:$0xf0]  ;;  %v3675_v45 = vld [vmem:[#allocation7 + $0x360] sm:$0xf] }
  0x4f   :  { %v3488_v44 = vor.u32 %v4661_v41, %v3485_v43  ;;  %v4712_v46 = vld [vmem:[#allocation7 + $0x374] sm:$0xf0]  ;;  %v3867_v47 = vld [vmem:[#allocation7 + $0x4e0] sm:$0xf]  ;;  %v4607_v50 = vld [vmem:[#allocation7 + $0x34] sm:$0xf] }
  0x50   :  { %1608 = vmatpush.bf16.msrb.mxu0 %v3268_v58  ;;  %v3676_v48 = vor.u32 %v4712_v46, %v3675_v45  ;;  %v4760_v49 = vld [vmem:[#allocation7 + $0x4f4] sm:$0xf0]  ;;  %v3269_v51 = vld [vmem:[#allocation7 + $0x48] sm:$0xf0]  ;;  %v4655_v54 = vld [vmem:[#allocation7 + $0x1b4] sm:$0xf] }
  0x51   :  { %1621 = vmatpush.bf16.msrb.mxu1 %v3460_v62  ;;  %v3868_v52 = vor.u32 %v4760_v49, %v3867_v47  ;;  %v3272_v53 = vor.u32 %v4607_v50, %v3269_v51  ;;  %v3461_v55 = vld [vmem:[#allocation7 + $0x1c8] sm:$0xf0]  ;;  %v3651_v57 = vld [vmem:[#allocation7 + $0x330] sm:$0xf]  ;;  %v4706_v58 = vld [vmem:[#allocation7 + $0x344] sm:$0xf0] }
  0x52   :  { %1631 = vmatpush.bf16.msrb.mxu2 %v3724_v1  ;;  %1644 = vmatpush.bf16.msrb.mxu3 %v3916_v3  ;;  %v3464_v56 = vor.u32 %v4655_v54, %v3461_v55  ;;  %v3843_v59 = vld [vmem:[#allocation7 + $0x4b0] sm:$0xf]  ;;  %v3652_v60 = vor.u32 %v4706_v58, %v3651_v57  ;;  %v4754_v61 = vld [vmem:[#allocation7 + $0x4c4] sm:$0xf0]  ;;  %v4601_v62 = vld [vmem:[#allocation7 + $0x4] sm:$0xf] }
  0x53   :  { %v3245_v63 = vld [vmem:[#allocation7 + $0x18] sm:$0xf0]  ;;  %v3844_v0 = vor.u32 %v4754_v61, %v3843_v59  ;;  %v4649_v2 = vld [vmem:[#allocation7 + $0x184] sm:$0xf]  ;;  %v3627_v5 = vld [vmem:[#allocation7 + $0x300] sm:$0xf] }
  0x54   :  { %3239 = vmatmul.msk.bf16.vlgmr.msra.gmra.mxu2 %vm287_vm1, %v5314_v29  ;;  %1609 = vmatpush.bf16.msrb.mxu0 %v3244_v7  ;;  %v3248_v1 = vor.u32 %v4601_v62, %v3245_v63  ;;  %v3437_v3 = vld [vmem:[#allocation7 + $0x198] sm:$0xf0]  ;;  %v4700_v6 = vld [vmem:[#allocation7 + $0x314] sm:$0xf0]  ;;  %v3819_v7 = vld [vmem:[#allocation7 + $0x480] sm:$0xf] }
  0x55   :  { %3240 = vmatmul.msk.bf16.vlgmr.msra.gmra.mxu3 %vm287_vm1, %v5314_v29  ;;  %1622 = vmatpush.bf16.msrb.mxu1 %v3436_v10  ;;  %v3533_v29 = vld [vmem:[#allocation7 + $0x258] sm:$0xf0]  ;;  %v3440_v4 = vor.u32 %v4649_v2, %v3437_v3  ;;  %v3628_v8 = vor.u32 %v4700_v6, %v3627_v5  ;;  %v4748_v9 = vld [vmem:[#allocation7 + $0x494] sm:$0xf0]  ;;  %v4739_v10 = vld [vmem:[#allocation7 + $0x454] sm:$0xf] }
  0x56   :  { %1632 = vmatpush.bf16.msrb.mxu2 %v3700_v15  ;;  %1645 = vmatpush.bf16.msrb.mxu3 %v3892_v18  ;;  %v3536_v32 = vor.u32 %v4673_v30, %v3533_v29  ;;  %v4787_v14 = vld [vmem:[#allocation7 + $0x5d4] sm:$0xf]  ;;  %v3989_v15 = vld [vmem:[#allocation7 + $0x5e8] sm:$0xf0]  ;;  %v4733_v17 = vld [vmem:[#allocation7 + $0x424] sm:$0xf] }
  0x57   :  { %v3992_v16 = vor.u32 %v4787_v14, %v3989_v15  ;;  %v3773_v18 = vld [vmem:[#allocation7 + $0x438] sm:$0xf0]  ;;  %v4727_v23 = vld [vmem:[#allocation7 + $0x3f4] sm:$0xf]  ;;  %v3749_v24 = vld [vmem:[#allocation7 + $0x408] sm:$0xf0] }
  0x58   :  { %1654 = vmatpush.bf16.msra.mxu0 %v3416_v11  ;;  %v3797_v11 = vld [vmem:[#allocation7 + $0x468] sm:$0xf0]  ;;  %v3965_v21 = vld [vmem:[#allocation7 + $0x5b8] sm:$0xf0]  ;;  %v4721_v29 = vld [vmem:[#allocation7 + $0x3c4] sm:$0xf] }
  0x59   :  { %1667 = vmatpush.bf16.msra.mxu1 %v3608_v12  ;;  %v3820_v12 = vor.u32 %v4748_v9, %v3819_v7  ;;  %v3800_v13 = vor.u32 %v4739_v10, %v3797_v11  ;;  %v3941_v27 = vld [vmem:[#allocation7 + $0x588] sm:$0xf0]  ;;  %v5336_v30 = vld [vmem:[#allocation6] sm:$0xff]  ;;  %v4763_v40 = vld [vmem:[#allocation7 + $0x514] sm:$0xf] }
  0x5a   :  { %1633 = vmatpush.bf16.msrb.mxu2 %v3676_v48  ;;  %1646 = vmatpush.bf16.msrb.mxu3 %v3868_v52  ;;  %v3917_v34 = vld [vmem:[#allocation7 + $0x558] sm:$0xf0]  ;;  %v203_v36 = vperm.slane %v5336_v30, 4  ;;  %v3701_v39 = vld [vmem:[#allocation7 + $0x3a8] sm:$0xf0]  ;;  %v199_v43 = vperm.slane %v5336_v30, 0 }
  0x5b   :  { %v200_v46 = vperm.slane %v5336_v30, 1  ;;  %v4709_v50 = vld [vmem:[#allocation7 + $0x364] sm:$0xf]  ;;  %v3677_v51 = vld [vmem:[#allocation7 + $0x378] sm:$0xf0] }
  0x5c   :  { %1655 = vmatpush.bf16.msra.mxu0 %v3392_v19  ;;  %v3776_v19 = vor.u32 %v4733_v17, %v3773_v18  ;;  %v4757_v54 = vld [vmem:[#allocation7 + $0x4e4] sm:$0xf]  ;;  %v3869_v55 = vld [vmem:[#allocation7 + $0x4f8] sm:$0xf0]  ;;  %v3419_v59 = vld [vmem:[#allocation7 + $0x158] sm:$0xf] }
  0x5d   :  { %1668 = vmatpush.bf16.msra.mxu1 %v3584_v20  ;;  %v4781_v20 = vld [vmem:[#allocation7 + $0x5a4] sm:$0xf]  ;;  %v3872_v61 = vor.u32 %v4757_v54, %v3869_v55  ;;  %v4703_v3 = vld [vmem:[#allocation7 + $0x334] sm:$0xf]  ;;  %v3395_v14 = vld [vmem:[#allocation7 + $0x128] sm:$0xf] }
  0x5e   :  { %1634 = vmatpush.bf16.msrb.mxu2 %v3652_v60  ;;  %1647 = vmatpush.bf16.msrb.mxu3 %v3844_v0  ;;  %v3968_v22 = vor.u32 %v4781_v20, %v3965_v21  ;;  %v4647_v60 = vld [vmem:[#allocation7 + $0x16c] sm:$0xf0]  ;;  %v3611_v0 = vld [vmem:[#allocation7 + $0x2d8] sm:$0xf]  ;;  %v4751_v7 = vld [vmem:[#allocation7 + $0x4b4] sm:$0xf] }
  0x5f   :  { %v4641_v15 = vld [vmem:[#allocation7 + $0x13c] sm:$0xf0]  ;;  %v4697_v21 = vld [vmem:[#allocation7 + $0x304] sm:$0xf] }
  0x60   :  { %1656 = vmatpush.bf16.msra.mxu0 %v3368_v25  ;;  %v3752_v25 = vor.u32 %v4727_v23, %v3749_v24  ;;  %v4689_v20 = vld [vmem:[#allocation7 + $0x2bc] sm:$0xf0]  ;;  %v3629_v24 = vld [vmem:[#allocation7 + $0x318] sm:$0xf0] }
  0x61   :  { %1669 = vmatpush.bf16.msra.mxu1 %v3560_v26  ;;  %v4775_v26 = vld [vmem:[#allocation7 + $0x574] sm:$0xf]  ;;  %v4617_v54 = vld [vmem:[#allocation7 + $0x7c] sm:$0xf0] }
  0x62   :  { %1635 = vmatpush.bf16.msrb.mxu2 %v3628_v8  ;;  %1648 = vmatpush.bf16.msrb.mxu3 %v3820_v12  ;;  %v3944_v28 = vor.u32 %v4775_v26, %v3941_v27  ;;  %v3845_v8 = vld [vmem:[#allocation7 + $0x4c8] sm:$0xf0]  ;;  %v3821_v26 = vld [vmem:[#allocation7 + $0x498] sm:$0xf0] }
  0x63   :  { %v3848_v11 = vor.u32 %v4751_v7, %v3845_v8  ;;  %v3251_v8 = vld [vmem:[#allocation7 + $0x8] sm:$0xf] }
  0x64   :  { %1657 = vmatpush.bf16.msra.mxu0 %v3344_v31  ;;  %v3725_v31 = vld [vmem:[#allocation7 + $0x3d8] sm:$0xf0] }
  0x65   :  { %1670 = vmatpush.bf16.msra.mxu1 %v3536_v32  ;;  %v4769_v32 = vld [vmem:[#allocation7 + $0x544] sm:$0xf]  ;;  %v3728_v33 = vor.u32 %v4721_v29, %v3725_v31  ;;  %v3396_v31 = vor.u32 %v4641_v15, %v3395_v14  ;;  %v4644_v14 = vld [vmem:[#allocation7 + $0x15c] sm:$0xf]  ;;  %v3421_v15 = vld [vmem:[#allocation7 + $0x170] sm:$0xf0] }
  0x66   :  { %1680 = vmatpush.bf16.msra.mxu2 %v3800_v13  ;;  %1693 = vmatpush.bf16.msra.mxu3 %v3992_v16  ;;  %v3920_v35 = vor.u32 %v4769_v32, %v3917_v34  ;;  %v3420_v13 = vor.u32 %v4647_v60, %v3419_v59  ;;  %v4635_v34 = vld [vmem:[#allocation7 + $0x10c] sm:$0xf0]  ;;  %v201_v60 = vperm.slane %v5336_v30, 2 }
  0x68   :  { %1658 = vmatpush.bf16.msra.mxu0 %v3320_v37  ;;  %v204_v37 = vperm.slane %v5336_v30, 5 }
  0x69   :  { %1671 = vmatpush.bf16.msra.mxu1 %v3512_v38  ;;  %v4715_v38 = vld [vmem:[#allocation7 + $0x394] sm:$0xf] }
  0x6a   :  { %1681 = vmatpush.bf16.msra.mxu2 %v3776_v19  ;;  %1694 = vmatpush.bf16.msra.mxu3 %v3968_v22  ;;  %v3704_v41 = vor.u32 %v4715_v38, %v3701_v39  ;;  %v3587_v19 = vld [vmem:[#allocation7 + $0x2a8] sm:$0xf] }
  0x6b   :  { %v3588_v32 = vor.u32 %v4689_v20, %v3587_v19  ;;  %v3347_v39 = vld [vmem:[#allocation7 + $0xc8] sm:$0xf]  ;;  %v4692_v19 = vld [vmem:[#allocation7 + $0x2dc] sm:$0xf]  ;;  %v3613_v20 = vld [vmem:[#allocation7 + $0x2f0] sm:$0xf0] }
  0x6c   :  { %1659 = vmatpush.bf16.msra.mxu0 %v3296_v42  ;;  %v3893_v42 = vld [vmem:[#allocation7 + $0x528] sm:$0xf0] }
  0x6d   :  { %1672 = vmatpush.bf16.msra.mxu1 %v3488_v44  ;;  %v3896_v45 = vor.u32 %v4763_v40, %v3893_v42  ;;  %v4629_v40 = vld [vmem:[#allocation7 + $0xdc] sm:$0xf0]  ;;  %v3539_v42 = vld [vmem:[#allocation7 + $0x248] sm:$0xf] }
  0x6e   :  { %1682 = vmatpush.bf16.msra.mxu2 %v3752_v25  ;;  %1695 = vmatpush.bf16.msra.mxu3 %v3944_v28  ;;  %v4745_v25 = vld [vmem:[#allocation7 + $0x484] sm:$0xf]  ;;  %v3632_v28 = vor.u32 %v4697_v21, %v3629_v24 }
  0x6f   :  { %v3824_v29 = vor.u32 %v4745_v25, %v3821_v26 }
  0x70   :  { %1660 = vmatpush.bf16.msra.mxu0 %v3272_v53  ;;  %v3680_v53 = vor.u32 %v4709_v50, %v3677_v51  ;;  %v4671_v50 = vld [vmem:[#allocation7 + $0x22c] sm:$0xf0] }
  0x71   :  { %1673 = vmatpush.bf16.msra.mxu1 %v3464_v56 }
  0x72   :  { %1683 = vmatpush.bf16.msra.mxu2 %v3728_v33  ;;  %1696 = vmatpush.bf16.msra.mxu3 %v3920_v35  ;;  %v3371_v33 = vld [vmem:[#allocation7 + $0xf8] sm:$0xf] }
  0x73   :  { %v3563_v35 = vld [vmem:[#allocation7 + $0x278] sm:$0xf] }
  0x74   :  { %1661 = vmatpush.bf16.msra.mxu0 %v3248_v1  ;;  %v4695_v1 = vld [vmem:[#allocation7 + $0x2ec] sm:$0xf0] }
  0x75   :  { %1674 = vmatpush.bf16.msra.mxu1 %v3440_v4  ;;  %v3653_v4 = vld [vmem:[#allocation7 + $0x348] sm:$0xf0]  ;;  %v3612_v18 = vor.u32 %v4695_v1, %v3611_v0  ;;  %v202_v0 = vperm.slane %v5336_v30, 3  ;;  %v3467_v1 = vld [vmem:[#allocation7 + $0x1b8] sm:$0xf] }
  0x76   :  { %1684 = vmatpush.bf16.msra.mxu2 %v3704_v41  ;;  %1697 = vmatpush.bf16.msra.mxu3 %v3896_v45  ;;  %v3656_v6 = vor.u32 %v4703_v3, %v3653_v4  ;;  %v3348_v45 = vor.u32 %v4629_v40, %v3347_v39  ;;  %v205_v3 = vperm.slane %v5336_v30, 6  ;;  %v206_v4 = vperm.slane %v5336_v30, 7  ;;  %v3803_v30 = vld [vmem:[#allocation7 + $0x458] sm:$0xf]  ;;  %v3589_v39 = vld [vmem:[#allocation7 + $0x2c0] sm:$0xf0] }
  0x7a   :  { %1685 = vmatpush.bf16.msra.mxu2 %v3680_v53  ;;  %1698 = vmatpush.bf16.msra.mxu3 %v3872_v61  ;;  %v3299_v53 = vld [vmem:[#allocation7 + $0x68] sm:$0xf] }
  0x7b   :  { %v3300_v59 = vor.u32 %v4617_v54, %v3299_v53  ;;  %v3373_v54 = vld [vmem:[#allocation7 + $0x110] sm:$0xf0] }
  0x7e   :  { %1686 = vmatpush.bf16.msra.mxu2 %v3656_v6  ;;  %1699 = vmatpush.bf16.msra.mxu3 %v3848_v11 }
  0x82   :  { %1687 = vmatpush.bf16.msra.mxu2 %v3632_v28  ;;  %1700 = vmatpush.bf16.msra.mxu3 %v3824_v29  ;;  %v4743_v28 = vld [vmem:[#allocation7 + $0x46c] sm:$0xf0]  ;;  %v3995_v29 = vld [vmem:[#allocation7 + $0x5d8] sm:$0xf] }
  0xb3   :  { %v377_v44 = vpop.f32.mrf.mxu0 }
  0xb4   :  { %v378_v47 = vadd.f32 %v377_v44, %v203_v36  ;;  %v390_v48 = vpop.f32.mrf.mxu1  ;;  %v4683_v36 = vld [vmem:[#allocation7 + $0x28c] sm:$0xf0] }
  0xb5   :  { %v391_v49 = vadd.f32 %v390_v48, %v204_v37  ;;  %v3372_v37 = vor.u32 %v4635_v34, %v3371_v33  ;;  %v3564_v38 = vor.u32 %v4683_v36, %v3563_v35  ;;  %v4623_v48 = vld [vmem:[#allocation7 + $0xac] sm:$0xf0]  ;;  %v3616_v33 = vor.u32 %v4692_v19, %v3613_v20  ;;  %v4638_v35 = vld [vmem:[#allocation7 + $0x12c] sm:$0xf]  ;;  %v3707_v20 = vld [vmem:[#allocation7 + $0x398] sm:$0xf] }
  0xb6   :  { %v424_v58 = vmax.f32 %v378_v47, 0.0  ;;  %v3323_v47 = vld [vmem:[#allocation7 + $0x98] sm:$0xf]  ;;  %v4791_v34 = vld [vmem:[#allocation7 + $0x5ec] sm:$0xf0] }
  0xb7   :  { %v325_v52 = vpop.f32.mrf.mxu2  ;;  %v425_v63 = vmax.f32 %v391_v49, 0.0  ;;  %v3515_v49 = vld [vmem:[#allocation7 + $0x218] sm:$0xf]  ;;  %v3324_v51 = vor.u32 %v4623_v48, %v3323_v47 }
  0xb8   :  { %v326_v56 = vadd.f32 %v325_v52, %v199_v43  ;;  %v338_v57 = vpop.f32.mrf.mxu3  ;;  %v4677_v43 = vld [vmem:[#allocation7 + $0x25c] sm:$0xf0]  ;;  %v3516_v52 = vor.u32 %v4671_v50, %v3515_v49  ;;  %v3971_v50 = vld [vmem:[#allocation7 + $0x5a8] sm:$0xf] }
  0xb9   :  { %v339_v62 = vadd.f32 %v338_v57, %v200_v46  ;;  %v3540_v46 = vor.u32 %v4677_v43, %v3539_v42  ;;  %v4665_v57 = vld [vmem:[#allocation7 + $0x1fc] sm:$0xf0]  ;;  %v3804_v42 = vor.u32 %v4743_v28, %v3803_v30  ;;  %v3996_v43 = vor.u32 %v4791_v34, %v3995_v29  ;;  %v4662_v28 = vld [vmem:[#allocation7 + $0x1ec] sm:$0xf]  ;;  %v3493_v29 = vld [vmem:[#allocation7 + $0x200] sm:$0xf0] }
  0xba   :  { %v420_v2 = vmax.f32 %v326_v56, 0.0  ;;  %v3491_v56 = vld [vmem:[#allocation7 + $0x1e8] sm:$0xf]  ;;  %v4713_v34 = vld [vmem:[#allocation7 + $0x37c] sm:$0xf0] }
  0xbb   :  { %v421_v5 = vmax.f32 %v339_v62, 0.0  ;;  %v379_v10 = vpop.f32.mrf.mxu0  ;;  %v3492_v61 = vor.u32 %v4665_v57, %v3491_v56  ;;  %v3275_v62 = vld [vmem:[#allocation7 + $0x38] sm:$0xf]  ;;  %v3565_v56 = vld [vmem:[#allocation7 + $0x290] sm:$0xf0] }
  0xbc   :  { %v428_v9 = vmax.f32 %v420_v2, %v424_v58  ;;  %v392_v16 = vpop.f32.mrf.mxu1  ;;  %v4659_v2 = vld [vmem:[#allocation7 + $0x1cc] sm:$0xf0]  ;;  %v3443_v10 = vld [vmem:[#allocation7 + $0x188] sm:$0xf] }
  0xbd   :  { %v429_v12 = vmax.f32 %v421_v5, %v425_v63  ;;  %v4611_v63 = vld [vmem:[#allocation7 + $0x4c] sm:$0xf0]  ;;  %v3468_v7 = vor.u32 %v4659_v2, %v3467_v1  ;;  %v4626_v1 = vld [vmem:[#allocation7 + $0xcc] sm:$0xf]  ;;  %v3349_v2 = vld [vmem:[#allocation7 + $0xe0] sm:$0xf0] }
  0xbe   :  { %v5342_v17 = vpack.c.bf16 %v428_v9, %v428_v9  ;;  %v3276_v5 = vor.u32 %v4611_v63, %v3275_v62  ;;  %v4605_v9 = vld [vmem:[#allocation7 + $0x1c] sm:$0xf0]  ;;  %v3947_v63 = vld [vmem:[#allocation7 + $0x578] sm:$0xf] }
  0xbf   :  { %v5344_v22 = vpack.c.bf16 %v429_v12, %v429_v12  ;;  %v327_v23 = vpop.f32.mrf.mxu2 }
  0xc0   :  { %v340_v27 = vpop.f32.mrf.mxu3  ;;  %1610 = vmatmul.bf16.vlgmr.msrb.gmra.mxu0 %v5342_v17  ;;  %v3252_v23 = vor.u32 %v4605_v9, %v3251_v8  ;;  %v4725_v8 = vld [vmem:[#allocation7 + $0x3dc] sm:$0xf0]  ;;  %v3352_v9 = vor.u32 %v4626_v1, %v3349_v2 }
  0xc1   :  { %1623 = vmatmul.bf16.vlgmr.msrb.gmra.mxu1 %v5344_v22  ;;  %1706 = vmatpush.bf16.msrb.mxu0 %v3420_v13  ;;  %v4653_v13 = vld [vmem:[#allocation7 + $0x19c] sm:$0xf0]  ;;  %v3424_v27 = vor.u32 %v4644_v14, %v3421_v15  ;;  %v3325_v14 = vld [vmem:[#allocation7 + $0xb0] sm:$0xf0]  ;;  %v4668_v15 = vld [vmem:[#allocation7 + $0x21c] sm:$0xf] }
  0xc2   :  { %1719 = vmatpush.bf16.msrb.mxu1 %v3612_v18  ;;  %v3444_v26 = vor.u32 %v4653_v13, %v3443_v10  ;;  %v4620_v13 = vld [vmem:[#allocation7 + $0x9c] sm:$0xf]  ;;  %v4701_v2 = vld [vmem:[#allocation7 + $0x31c] sm:$0xf0] }
  0xc5   :  { %1707 = vmatpush.bf16.msrb.mxu0 %v3396_v31 }
  0xc6   :  { %1720 = vmatpush.bf16.msrb.mxu1 %v3588_v32 }
  0xc7   :  { %v351_v41 = vpop.f32.mrf.mxu2 }
  0xc8   :  { %v364_v44 = vpop.f32.mrf.mxu3  ;;  %v352_v6 = vadd.f32 %v351_v41, %v201_v60  ;;  %v4731_v60 = vld [vmem:[#allocation7 + $0x40c] sm:$0xf0] }
  0xc9   :  { %1708 = vmatpush.bf16.msrb.mxu0 %v3372_v37  ;;  %v365_v11 = vadd.f32 %v364_v44, %v202_v0  ;;  %v3397_v37 = vld [vmem:[#allocation7 + $0x140] sm:$0xf0]  ;;  %v3779_v44 = vld [vmem:[#allocation7 + $0x428] sm:$0xf]  ;;  %v4779_v0 = vld [vmem:[#allocation7 + $0x58c] sm:$0xf0] }
  0xca   :  { %1721 = vmatpush.bf16.msrb.mxu1 %v3564_v38  ;;  %v422_v24 = vmax.f32 %v352_v6, 0.0  ;;  %v4686_v38 = vld [vmem:[#allocation7 + $0x2ac] sm:$0xf]  ;;  %v3400_v48 = vor.u32 %v4638_v35, %v3397_v37  ;;  %v3948_v6 = vor.u32 %v4779_v0, %v3947_v63  ;;  %v3875_v37 = vld [vmem:[#allocation7 + $0x4e8] sm:$0xf] }
  0xcb   :  { %v423_v31 = vmax.f32 %v365_v11, 0.0  ;;  %v3592_v49 = vor.u32 %v4686_v38, %v3589_v39  ;;  %v3923_v11 = vld [vmem:[#allocation7 + $0x548] sm:$0xf]  ;;  %v4761_v38 = vld [vmem:[#allocation7 + $0x4fc] sm:$0xf0] }
  0xcc   :  { %v4608_v39 = vld [vmem:[#allocation7 + $0x3c] sm:$0xf]  ;;  %v3635_v63 = vld [vmem:[#allocation7 + $0x308] sm:$0xf] }
  0xcd   :  { %1709 = vmatpush.bf16.msrb.mxu0 %v3348_v45  ;;  %v4737_v45 = vld [vmem:[#allocation7 + $0x43c] sm:$0xf0] }
  0xce   :  { %1722 = vmatpush.bf16.msrb.mxu1 %v3540_v46  ;;  %v3780_v57 = vor.u32 %v4737_v45, %v3779_v44  ;;  %v3876_v45 = vor.u32 %v4761_v38, %v3875_v37  ;;  %v4776_v37 = vld [vmem:[#allocation7 + $0x57c] sm:$0xf]  ;;  %v3949_v38 = vld [vmem:[#allocation7 + $0x590] sm:$0xf0] }
  0xcf   :  { %v353_v55 = vpop.f32.mrf.mxu2 }
  0xd0   :  { %v366_v58 = vpop.f32.mrf.mxu3  ;;  %1662 = vmatmul.bf16.vlgmr.msra.gmra.mxu0 %v5342_v17  ;;  %v4680_v55 = vld [vmem:[#allocation7 + $0x27c] sm:$0xf] }
  0xd1   :  { %1675 = vmatmul.bf16.vlgmr.msra.gmra.mxu1 %v5344_v22  ;;  %1710 = vmatpush.bf16.msrb.mxu0 %v3324_v51  ;;  %v4785_v51 = vld [vmem:[#allocation7 + $0x5bc] sm:$0xf0]  ;;  %v3568_v62 = vor.u32 %v4680_v55, %v3565_v56  ;;  %v4650_v55 = vld [vmem:[#allocation7 + $0x18c] sm:$0xf]  ;;  %v3445_v56 = vld [vmem:[#allocation7 + $0x1a0] sm:$0xf0] }
  0xd2   :  { %1723 = vmatpush.bf16.msrb.mxu1 %v3516_v52  ;;  %v4632_v52 = vld [vmem:[#allocation7 + $0xfc] sm:$0xf]  ;;  %v3972_v58 = vor.u32 %v4785_v51, %v3971_v50  ;;  %v3448_v1 = vor.u32 %v4650_v55, %v3445_v56  ;;  %v3523_v55 = vld [vmem:[#allocation7 + $0x220] sm:$0xf]  ;;  %v4672_v56 = vld [vmem:[#allocation7 + $0x234] sm:$0xf0] }
  0xd5   :  { %1711 = vmatpush.bf16.msrb.mxu0 %v3300_v59  ;;  %v3755_v59 = vld [vmem:[#allocation7 + $0x3f8] sm:$0xf] }
  0xd6   :  { %1724 = vmatpush.bf16.msrb.mxu1 %v3492_v61  ;;  %v3376_v61 = vor.u32 %v4632_v52, %v3373_v54  ;;  %v4755_v52 = vld [vmem:[#allocation7 + $0x4cc] sm:$0xf0]  ;;  %v3253_v54 = vld [vmem:[#allocation7 + $0x20] sm:$0xf0] }
  0xd7   :  { %v403_v12 = vpop.f32.mrf.mxu2 }
  0xd8   :  { %v404_v16 = vadd.f32 %v403_v12, %v205_v3  ;;  %v416_v18 = vpop.f32.mrf.mxu3  ;;  %v4674_v3 = vld [vmem:[#allocation7 + $0x24c] sm:$0xf]  ;;  %v4773_v12 = vld [vmem:[#allocation7 + $0x55c] sm:$0xf0] }
  0xd9   :  { %v417_v21 = vadd.f32 %v416_v18, %v206_v4  ;;  %1712 = vmatpush.bf16.msrb.mxu0 %v3276_v5  ;;  %v3541_v4 = vld [vmem:[#allocation7 + $0x260] sm:$0xf0]  ;;  %v3756_v5 = vor.u32 %v4731_v60, %v3755_v59  ;;  %v3924_v19 = vor.u32 %v4773_v12, %v3923_v11  ;;  %v3619_v59 = vld [vmem:[#allocation7 + $0x2e0] sm:$0xf]  ;;  %v4696_v60 = vld [vmem:[#allocation7 + $0x2f4] sm:$0xf0]  ;;  %v3636_v12 = vor.u32 %v4701_v2, %v3635_v63 }
  0xda   :  { %v426_v25 = vmax.f32 %v404_v16, 0.0  ;;  %1725 = vmatpush.bf16.msrb.mxu1 %v3468_v7  ;;  %v3731_v7 = vld [vmem:[#allocation7 + $0x3c8] sm:$0xf]  ;;  %v3544_v10 = vor.u32 %v4674_v3, %v3541_v4  ;;  %v3517_v16 = vld [vmem:[#allocation7 + $0x230] sm:$0xf0] }
  0xdb   :  { %v427_v32 = vmax.f32 %v417_v21, 0.0  ;;  %v3732_v18 = vor.u32 %v4725_v8, %v3731_v7  ;;  %v4719_v21 = vld [vmem:[#allocation7 + $0x3ac] sm:$0xf0]  ;;  %v3520_v30 = vor.u32 %v4668_v15, %v3517_v16  ;;  %v3827_v3 = vld [vmem:[#allocation7 + $0x488] sm:$0xf] }
  0xdc   :  { %v430_v36 = vmax.f32 %v422_v24, %v426_v25  ;;  %v3899_v24 = vld [vmem:[#allocation7 + $0x518] sm:$0xf]  ;;  %v4767_v25 = vld [vmem:[#allocation7 + $0x52c] sm:$0xf0]  ;;  %v4749_v4 = vld [vmem:[#allocation7 + $0x49c] sm:$0xf0] }
  0xdd   :  { %v431_v40 = vmax.f32 %v423_v31, %v427_v32  ;;  %1713 = vmatpush.bf16.msrb.mxu0 %v3252_v23  ;;  %v3328_v23 = vor.u32 %v4620_v13, %v3325_v14  ;;  %v3708_v31 = vor.u32 %v4719_v21, %v3707_v20  ;;  %v3900_v32 = vor.u32 %v4767_v25, %v3899_v24  ;;  %v4740_v7 = vld [vmem:[#allocation7 + $0x45c] sm:$0xf]  ;;  %v3805_v8 = vld [vmem:[#allocation7 + $0x470] sm:$0xf0]  ;;  %v3403_v11 = vld [vmem:[#allocation7 + $0x130] sm:$0xf] }
  0xde   :  { %v5354_v41 = vpack.c.bf16 %v430_v36, %v430_v36  ;;  %1726 = vmatpush.bf16.msrb.mxu1 %v3444_v26  ;;  %v4614_v26 = vld [vmem:[#allocation7 + $0x6c] sm:$0xf]  ;;  %v3496_v36 = vor.u32 %v4662_v28, %v3493_v29  ;;  %v3828_v13 = vor.u32 %v4749_v4, %v3827_v3  ;;  %v4642_v14 = vld [vmem:[#allocation7 + $0x144] sm:$0xf0]  ;;  %v3595_v15 = vld [vmem:[#allocation7 + $0x2b0] sm:$0xf] }
  0xdf   :  { %v5356_v46 = vpack.c.bf16 %v431_v40, %v431_v40  ;;  %v405_v47 = vpop.f32.mrf.mxu2  ;;  %v3277_v40 = vld [vmem:[#allocation7 + $0x50] sm:$0xf0]  ;;  %v4690_v16 = vld [vmem:[#allocation7 + $0x2c4] sm:$0xf0]  ;;  %v4734_v20 = vld [vmem:[#allocation7 + $0x42c] sm:$0xf] }
  0xe0   :  { %v418_v53 = vpop.f32.mrf.mxu3  ;;  %1636 = vmatmul.bf16.vlgmr.msrb.gmra.mxu2 %v5354_v41  ;;  %1714 = vmatmul.bf16.vlgmr.msrb.gmra.mxu0 %v5342_v17  ;;  %v3659_v47 = vld [vmem:[#allocation7 + $0x338] sm:$0xf]  ;;  %v3280_v50 = vor.u32 %v4608_v39, %v3277_v40  ;;  %v3781_v21 = vld [vmem:[#allocation7 + $0x440] sm:$0xf0]  ;;  %v4782_v24 = vld [vmem:[#allocation7 + $0x5ac] sm:$0xf] }
  0xe1   :  { %1758 = vmatpush.bf16.msra.mxu0 %v3424_v27  ;;  %1649 = vmatmul.bf16.vlgmr.msrb.gmra.mxu3 %v5356_v46  ;;  %v3301_v27 = vld [vmem:[#allocation7 + $0x80] sm:$0xf0]  ;;  %v4602_v53 = vld [vmem:[#allocation7 + $0xc] sm:$0xf]  ;;  %v3571_v28 = vld [vmem:[#allocation7 + $0x280] sm:$0xf] }
  0xe2   :  { %1771 = vmatpush.bf16.msra.mxu1 %v3616_v33  ;;  %1732 = vmatpush.bf16.msrb.mxu2 %v3804_v42  ;;  %v3683_v33 = vld [vmem:[#allocation7 + $0x368] sm:$0xf]  ;;  %v3304_v35 = vor.u32 %v4614_v26, %v3301_v27  ;;  %v4656_v42 = vld [vmem:[#allocation7 + $0x1bc] sm:$0xf]  ;;  %v3256_v0 = vor.u32 %v4602_v53, %v3253_v54  ;;  %v3973_v25 = vld [vmem:[#allocation7 + $0x5c0] sm:$0xf0] }
  0xe3   :  { %1727 = vmatmul.bf16.vlgmr.msrb.gmra.mxu1 %v5344_v22  ;;  %1745 = vmatpush.bf16.msrb.mxu3 %v3996_v43  ;;  %v3469_v43 = vld [vmem:[#allocation7 + $0x1d0] sm:$0xf0]  ;;  %v3684_v44 = vor.u32 %v4713_v34, %v3683_v33  ;;  %v3379_v26 = vld [vmem:[#allocation7 + $0x100] sm:$0xf]  ;;  %v4636_v27 = vld [vmem:[#allocation7 + $0x114] sm:$0xf0] }
  0xe4   :  { %v3472_v51 = vor.u32 %v4656_v42, %v3469_v43  ;;  %v4684_v29 = vld [vmem:[#allocation7 + $0x294] sm:$0xf0]  ;;  %v4728_v33 = vld [vmem:[#allocation7 + $0x3fc] sm:$0xf]  ;;  %v3757_v34 = vld [vmem:[#allocation7 + $0x410] sm:$0xf0] }
  0xe5   :  { %1759 = vmatpush.bf16.msra.mxu0 %v3400_v48  ;;  %v4707_v48 = vld [vmem:[#allocation7 + $0x34c] sm:$0xf0]  ;;  %v4630_v40 = vld [vmem:[#allocation7 + $0xe4] sm:$0xf0]  ;;  %v3331_v53 = vld [vmem:[#allocation7 + $0xa0] sm:$0xf] }
  0xe6   :  { %1772 = vmatpush.bf16.msra.mxu1 %v3592_v49  ;;  %1733 = vmatpush.bf16.msrb.mxu2 %v3780_v57  ;;  %v3851_v49 = vld [vmem:[#allocation7 + $0x4b8] sm:$0xf]  ;;  %v3427_v57 = vld [vmem:[#allocation7 + $0x160] sm:$0xf]  ;;  %v3355_v39 = vld [vmem:[#allocation7 + $0xd0] sm:$0xf] }
  0xe7   :  { %1746 = vmatpush.bf16.msrb.mxu3 %v3972_v58  ;;  %v4648_v58 = vld [vmem:[#allocation7 + $0x174] sm:$0xf0]  ;;  %v3547_v42 = vld [vmem:[#allocation7 + $0x250] sm:$0xf]  ;;  %v4678_v43 = vld [vmem:[#allocation7 + $0x264] sm:$0xf0] }
  0xe8   :  { %v4624_v54 = vld [vmem:[#allocation7 + $0xb4] sm:$0xf0]  ;;  %v4764_v63 = vld [vmem:[#allocation7 + $0x51c] sm:$0xf]  ;;  %v4618_v2 = vld [vmem:[#allocation7 + $0x84] sm:$0xf0] }
  0xe9   :  { %1760 = vmatpush.bf16.msra.mxu0 %v3376_v61  ;;  %v3660_v61 = vor.u32 %v4707_v48, %v3659_v47  ;;  %v4722_v47 = vld [vmem:[#allocation7 + $0x3cc] sm:$0xf]  ;;  %v3733_v48 = vld [vmem:[#allocation7 + $0x3e0] sm:$0xf0]  ;;  %v3499_v3 = vld [vmem:[#allocation7 + $0x1f0] sm:$0xf] }
  0xea   :  { %1773 = vmatpush.bf16.msra.mxu1 %v3568_v62  ;;  %1734 = vmatpush.bf16.msrb.mxu2 %v3756_v5  ;;  %v3852_v62 = vor.u32 %v4755_v52, %v3851_v49  ;;  %v3428_v5 = vor.u32 %v4648_v58, %v3427_v57  ;;  %v3356_v49 = vor.u32 %v4630_v40, %v3355_v39  ;;  %v3925_v52 = vld [vmem:[#allocation7 + $0x560] sm:$0xf0]  ;;  %v4666_v4 = vld [vmem:[#allocation7 + $0x204] sm:$0xf0] }
  0xeb   :  { %1747 = vmatpush.bf16.msrb.mxu3 %v3948_v6  ;;  %v3620_v6 = vor.u32 %v4696_v60, %v3619_v59  ;;  %v3736_v57 = vor.u32 %v4722_v47, %v3733_v48  ;;  %v4716_v59 = vld [vmem:[#allocation7 + $0x39c] sm:$0xf]  ;;  %v3709_v60 = vld [vmem:[#allocation7 + $0x3b0] sm:$0xf0]  ;;  %v3637_v40 = vld [vmem:[#allocation7 + $0x320] sm:$0xf0] }
  0xec   :  { %v3811_v47 = vld [vmem:[#allocation7 + $0x460] sm:$0xf]  ;;  %v4744_v48 = vld [vmem:[#allocation7 + $0x474] sm:$0xf0] }
  0xed   :  { %1761 = vmatpush.bf16.msra.mxu0 %v3352_v9  ;;  %v4788_v9 = vld [vmem:[#allocation7 + $0x5dc] sm:$0xf] }
  0xee   :  { %1774 = vmatpush.bf16.msra.mxu1 %v3544_v10  ;;  %1735 = vmatpush.bf16.msrb.mxu2 %v3732_v18  ;;  %v3997_v10 = vld [vmem:[#allocation7 + $0x5f0] sm:$0xf0]  ;;  %v3808_v18 = vor.u32 %v4740_v7, %v3805_v8  ;;  %v4710_v7 = vld [vmem:[#allocation7 + $0x36c] sm:$0xf]  ;;  %v3685_v8 = vld [vmem:[#allocation7 + $0x380] sm:$0xf0] }
  0xef   :  { %1748 = vmatpush.bf16.msrb.mxu3 %v3924_v19  ;;  %v4000_v19 = vor.u32 %v4788_v9, %v3997_v10  ;;  %v3500_v10 = vor.u32 %v4666_v4, %v3499_v3  ;;  %v4681_v3 = vld [vmem:[#allocation7 + $0x284] sm:$0xf]  ;;  %v3573_v4 = vld [vmem:[#allocation7 + $0x298] sm:$0xf0] }
  0xf0   :  { %1688 = vmatmul.bf16.vlgmr.msra.gmra.mxu2 %v5354_v41 }
  0xf1   :  { %1762 = vmatpush.bf16.msra.mxu0 %v3328_v23  ;;  %1701 = vmatmul.bf16.vlgmr.msra.gmra.mxu3 %v5356_v46  ;;  %v3404_v23 = vor.u32 %v4642_v14, %v3403_v11  ;;  %v4758_v11 = vld [vmem:[#allocation7 + $0x4ec] sm:$0xf]  ;;  %v4612_v14 = vld [vmem:[#allocation7 + $0x54] sm:$0xf0] }
  0xf2   :  { %1775 = vmatpush.bf16.msra.mxu1 %v3520_v30  ;;  %1736 = vmatpush.bf16.msrb.mxu2 %v3708_v31  ;;  %v3596_v30 = vor.u32 %v4690_v16, %v3595_v15  ;;  %v3784_v31 = vor.u32 %v4734_v20, %v3781_v21  ;;  %v3475_v15 = vld [vmem:[#allocation7 + $0x1c0] sm:$0xf]  ;;  %v4660_v16 = vld [vmem:[#allocation7 + $0x1d4] sm:$0xf0]  ;;  %v4704_v20 = vld [vmem:[#allocation7 + $0x33c] sm:$0xf] }
  0xf3   :  { %1749 = vmatpush.bf16.msrb.mxu3 %v3900_v32  ;;  %v3976_v32 = vor.u32 %v4782_v24, %v3973_v25  ;;  %v3661_v21 = vld [vmem:[#allocation7 + $0x350] sm:$0xf0]  ;;  %v3476_v24 = vor.u32 %v4660_v16, %v3475_v15  ;;  %v3549_v16 = vld [vmem:[#allocation7 + $0x268] sm:$0xf0] }
  0xf4   :  { %v3853_v25 = vld [vmem:[#allocation7 + $0x4d0] sm:$0xf0] }
  0xf5   :  { %1763 = vmatpush.bf16.msra.mxu0 %v3304_v35  ;;  %v3380_v35 = vor.u32 %v4636_v27, %v3379_v26  ;;  %v3259_v26 = vld [vmem:[#allocation7 + $0x10] sm:$0xf]  ;;  %v4606_v27 = vld [vmem:[#allocation7 + $0x24] sm:$0xf0]  ;;  %v4675_v15 = vld [vmem:[#allocation7 + $0x254] sm:$0xf] }
  0xf6   :  { %1776 = vmatpush.bf16.msra.mxu1 %v3496_v36  ;;  %1737 = vmatpush.bf16.msrb.mxu2 %v3684_v44  ;;  %v3572_v36 = vor.u32 %v4684_v29, %v3571_v28  ;;  %v3760_v44 = vor.u32 %v4728_v33, %v3757_v34  ;;  %v3451_v28 = vld [vmem:[#allocation7 + $0x190] sm:$0xf]  ;;  %v4654_v29 = vld [vmem:[#allocation7 + $0x1a4] sm:$0xf0]  ;;  %v4693_v33 = vld [vmem:[#allocation7 + $0x2e4] sm:$0xf] }
  0xf7   :  { %1750 = vmatpush.bf16.msrb.mxu3 %v3876_v45  ;;  %v3952_v45 = vor.u32 %v4776_v37, %v3949_v38  ;;  %v3621_v34 = vld [vmem:[#allocation7 + $0x2f8] sm:$0xf0]  ;;  %v4698_v37 = vld [vmem:[#allocation7 + $0x30c] sm:$0xf]  ;;  %v3260_v38 = vor.u32 %v4606_v27, %v3259_v26  ;;  %v3452_v39 = vor.u32 %v4654_v29, %v3451_v28  ;;  %v4621_v26 = vld [vmem:[#allocation7 + $0xa4] sm:$0xf] }
  0xf8   :  { %v3333_v27 = vld [vmem:[#allocation7 + $0xb8] sm:$0xf0]  ;;  %v4669_v28 = vld [vmem:[#allocation7 + $0x224] sm:$0xf] }
  0xf9   :  { %1764 = vmatpush.bf16.msra.mxu0 %v3280_v50  ;;  %v3548_v50 = vor.u32 %v4678_v43, %v3547_v42  ;;  %v4746_v42 = vld [vmem:[#allocation7 + $0x48c] sm:$0xf]  ;;  %v3829_v43 = vld [vmem:[#allocation7 + $0x4a0] sm:$0xf0]  ;;  %v3525_v29 = vld [vmem:[#allocation7 + $0x238] sm:$0xf0] }
  0xfa   :  { %1777 = vmatpush.bf16.msra.mxu1 %v3472_v51  ;;  %1738 = vmatpush.bf16.msrb.mxu2 %v3660_v61  ;;  %v4770_v51 = vld [vmem:[#allocation7 + $0x54c] sm:$0xf]  ;;  %v3332_v61 = vor.u32 %v4624_v54, %v3331_v53  ;;  %v3832_v53 = vor.u32 %v4746_v42, %v3829_v43  ;;  %v4663_v42 = vld [vmem:[#allocation7 + $0x1f4] sm:$0xf] }
  0xfb   :  { %1751 = vmatpush.bf16.msrb.mxu3 %v3852_v62  ;;  %v3928_v58 = vor.u32 %v4770_v51, %v3925_v52  ;;  %v3524_v62 = vor.u32 %v4672_v56, %v3523_v55  ;;  %v4639_v51 = vld [vmem:[#allocation7 + $0x134] sm:$0xf]  ;;  %v3640_v52 = vor.u32 %v4698_v37, %v3637_v40  ;;  %v3405_v54 = vld [vmem:[#allocation7 + $0x148] sm:$0xf0]  ;;  %v3907_v37 = vld [vmem:[#allocation7 + $0x520] sm:$0xf] }
  0xfc   :  { %v4687_v55 = vld [vmem:[#allocation7 + $0x2b4] sm:$0xf]  ;;  %v3597_v56 = vld [vmem:[#allocation7 + $0x2c8] sm:$0xf0] }
  0xfd   :  { %1765 = vmatpush.bf16.msra.mxu0 %v3256_v0  ;;  %v3901_v0 = vld [vmem:[#allocation7 + $0x530] sm:$0xf0]  ;;  %v3309_v40 = vld [vmem:[#allocation7 + $0x88] sm:$0xf0] }
  0xfe   :  { %1778 = vmatpush.bf16.msra.mxu1 %v3448_v1  ;;  %1739 = vmatpush.bf16.msrb.mxu2 %v3636_v12  ;;  %v3307_v1 = vld [vmem:[#allocation7 + $0x70] sm:$0xf]  ;;  %v3877_v12 = vld [vmem:[#allocation7 + $0x500] sm:$0xf0]  ;;  %v3501_v43 = vld [vmem:[#allocation7 + $0x208] sm:$0xf0] }
  0xff   :  { %1752 = vmatpush.bf16.msrb.mxu3 %v3828_v13  ;;  %v3308_v9 = vor.u32 %v4618_v2, %v3307_v1  ;;  %v3283_v13 = vld [vmem:[#allocation7 + $0x40] sm:$0xf]  ;;  %v4633_v1 = vld [vmem:[#allocation7 + $0x104] sm:$0xf]  ;;  %v3381_v2 = vld [vmem:[#allocation7 + $0x118] sm:$0xf0] }
 0x100   :  { %1766 = vmatmul.bf16.vlgmr.msra.gmra.mxu0 %v5342_v17 }
 0x101   :  { %1810 = vmatpush.bf16.msrb.mxu0 %v3428_v5  ;;  %1779 = vmatmul.bf16.vlgmr.msra.gmra.mxu1 %v5344_v22  ;;  %v3712_v5 = vor.u32 %v4716_v59, %v3709_v60  ;;  %v3787_v59 = vld [vmem:[#allocation7 + $0x430] sm:$0xf]  ;;  %v4738_v60 = vld [vmem:[#allocation7 + $0x444] sm:$0xf0] }
 0x102   :  { %1823 = vmatpush.bf16.msrb.mxu1 %v3620_v6  ;;  %1784 = vmatpush.bf16.msra.mxu2 %v3808_v18  ;;  %v3904_v6 = vor.u32 %v4764_v63, %v3901_v0  ;;  %v3688_v18 = vor.u32 %v4710_v7, %v3685_v8  ;;  %v3979_v63 = vld [vmem:[#allocation7 + $0x5b0] sm:$0xf]  ;;  %v4786_v0 = vld [vmem:[#allocation7 + $0x5c4] sm:$0xf0]  ;;  %v3763_v7 = vld [vmem:[#allocation7 + $0x400] sm:$0xf] }
 0x103   :  { %1797 = vmatpush.bf16.msra.mxu3 %v4000_v19  ;;  %1740 = vmatmul.bf16.vlgmr.msrb.gmra.mxu2 %v5354_v41  ;;  %v3880_v19 = vor.u32 %v4758_v11, %v3877_v12  ;;  %v4732_v8 = vld [vmem:[#allocation7 + $0x414] sm:$0xf0]  ;;  %v3955_v11 = vld [vmem:[#allocation7 + $0x580] sm:$0xf] }
 0x104   :  { %1753 = vmatmul.bf16.vlgmr.msrb.gmra.mxu3 %v5356_v46  ;;  %v4780_v12 = vld [vmem:[#allocation7 + $0x594] sm:$0xf0] }
 0x105   :  { %1811 = vmatpush.bf16.msrb.mxu0 %v3404_v23  ;;  %v4752_v23 = vld [vmem:[#allocation7 + $0x4bc] sm:$0xf] }
 0x106   :  { %1824 = vmatpush.bf16.msrb.mxu1 %v3596_v30  ;;  %1785 = vmatpush.bf16.msra.mxu2 %v3784_v31  ;;  %v3284_v30 = vor.u32 %v4612_v14, %v3283_v13  ;;  %v4645_v31 = vld [vmem:[#allocation7 + $0x164] sm:$0xf]  ;;  %v4627_v13 = vld [vmem:[#allocation7 + $0xd4] sm:$0xf]  ;;  %v3357_v14 = vld [vmem:[#allocation7 + $0xe8] sm:$0xf0] }
 0x107   :  { %1798 = vmatpush.bf16.msra.mxu3 %v3976_v32  ;;  %v3429_v32 = vld [vmem:[#allocation7 + $0x178] sm:$0xf0] }
 0x109   :  { %1812 = vmatpush.bf16.msrb.mxu0 %v3380_v35  ;;  %v3664_v35 = vor.u32 %v4704_v20, %v3661_v21  ;;  %v3739_v20 = vld [vmem:[#allocation7 + $0x3d0] sm:$0xf]  ;;  %v4726_v21 = vld [vmem:[#allocation7 + $0x3e4] sm:$0xf0] }
 0x10a   :  { %1825 = vmatpush.bf16.msrb.mxu1 %v3572_v36  ;;  %1786 = vmatpush.bf16.msra.mxu2 %v3760_v44  ;;  %v3856_v36 = vor.u32 %v4752_v23, %v3853_v25  ;;  %v3432_v44 = vor.u32 %v4645_v31, %v3429_v32  ;;  %v3360_v23 = vor.u32 %v4627_v13, %v3357_v14  ;;  %v4774_v25 = vld [vmem:[#allocation7 + $0x564] sm:$0xf0]  ;;  %v4741_v13 = vld [vmem:[#allocation7 + $0x464] sm:$0xf]  ;;  %v3813_v14 = vld [vmem:[#allocation7 + $0x478] sm:$0xf0] }
 0x10b   :  { %1799 = vmatpush.bf16.msra.mxu3 %v3952_v45  ;;  %v3624_v45 = vor.u32 %v4693_v33, %v3621_v34  ;;  %v3740_v31 = vor.u32 %v4726_v21, %v3739_v20  ;;  %v3715_v33 = vld [vmem:[#allocation7 + $0x3a0] sm:$0xf]  ;;  %v4720_v34 = vld [vmem:[#allocation7 + $0x3b4] sm:$0xf0]  ;;  %v3816_v21 = vor.u32 %v4741_v13, %v3813_v14 }
 0x10c   :  { %v5372_v20 = vld [vmem:[#allocation9] sm:$0x3f] }
 0x10d   :  { %1813 = vmatpush.bf16.msrb.mxu0 %v3356_v49  ;;  %v4003_v49 = vld [vmem:[#allocation7 + $0x5e0] sm:$0xf] }
 0x10e   :  { %1826 = vmatpush.bf16.msrb.mxu1 %v3548_v50  ;;  %1787 = vmatpush.bf16.msra.mxu2 %v3736_v57  ;;  %v4792_v50 = vld [vmem:[#allocation7 + $0x5f4] sm:$0xf0]  ;;  %v3812_v57 = vor.u32 %v4744_v48, %v3811_v47  ;;  %v3691_v47 = vld [vmem:[#allocation7 + $0x370] sm:$0xf]  ;;  %v4714_v48 = vld [vmem:[#allocation7 + $0x384] sm:$0xf0] }
 0x10f   :  { %1800 = vmatpush.bf16.msra.mxu3 %v3928_v58  ;;  %v4004_v58 = vor.u32 %v4792_v50, %v4003_v49  ;;  %v3504_v50 = vor.u32 %v4663_v42, %v3501_v43  ;;  %v4771_v42 = vld [vmem:[#allocation7 + $0x554] sm:$0xf]  ;;  %v3933_v43 = vld [vmem:[#allocation7 + $0x568] sm:$0xf0] }
 0x111   :  { %1814 = vmatpush.bf16.msrb.mxu0 %v3332_v61  ;;  %v3408_v61 = vor.u32 %v4639_v51, %v3405_v54  ;;  %v3883_v51 = vld [vmem:[#allocation7 + $0x4f0] sm:$0xf]  ;;  %v3285_v54 = vld [vmem:[#allocation7 + $0x58] sm:$0xf0] }
 0x112   :  { %1827 = vmatpush.bf16.msrb.mxu1 %v3524_v62  ;;  %1788 = vmatpush.bf16.msra.mxu2 %v3712_v5  ;;  %v3600_v62 = vor.u32 %v4687_v55, %v3597_v56  ;;  %v3788_v5 = vor.u32 %v4738_v60, %v3787_v59  ;;  %v4657_v55 = vld [vmem:[#allocation7 + $0x1c4] sm:$0xf]  ;;  %v3477_v56 = vld [vmem:[#allocation7 + $0x1d8] sm:$0xf0]  ;;  %v3667_v59 = vld [vmem:[#allocation7 + $0x340] sm:$0xf] }
 0x113   :  { %1801 = vmatpush.bf16.msra.mxu3 %v3904_v6  ;;  %v3980_v6 = vor.u32 %v4786_v0, %v3979_v63  ;;  %v4708_v60 = vld [vmem:[#allocation7 + $0x354] sm:$0xf0]  ;;  %v3859_v63 = vld [vmem:[#allocation7 + $0x4c0] sm:$0xf] }
 0x114   :  { %v4756_v0 = vld [vmem:[#allocation7 + $0x4d4] sm:$0xf0] }
 0x115   :  { %1815 = vmatpush.bf16.msrb.mxu0 %v3308_v9  ;;  %v3384_v9 = vor.u32 %v4633_v1, %v3381_v2  ;;  %v4603_v1 = vld [vmem:[#allocation7 + $0x14] sm:$0xf]  ;;  %v3261_v2 = vld [vmem:[#allocation7 + $0x28] sm:$0xf0] }
 0x116   :  { %1828 = vmatpush.bf16.msrb.mxu1 %v3500_v10  ;;  %1789 = vmatpush.bf16.msra.mxu2 %v3688_v18  ;;  %v3576_v10 = vor.u32 %v4681_v3, %v3573_v4  ;;  %v3764_v18 = vor.u32 %v4732_v8, %v3763_v7  ;;  %v4651_v3 = vld [vmem:[#allocation7 + $0x194] sm:$0xf]  ;;  %v3453_v4 = vld [vmem:[#allocation7 + $0x1a8] sm:$0xf0]  ;;  %v3643_v7 = vld [vmem:[#allocation7 + $0x310] sm:$0xf]  ;;  %v3264_v8 = vor.u32 %v4603_v1, %v3261_v2 }
 0x117   :  { %1802 = vmatpush.bf16.msra.mxu3 %v3880_v19  ;;  %v3956_v19 = vor.u32 %v4780_v12, %v3955_v11  ;;  %v3835_v11 = vld [vmem:[#allocation7 + $0x490] sm:$0xf]  ;;  %v4750_v12 = vld [vmem:[#allocation7 + $0x4a4] sm:$0xf0]  ;;  %v4753_v1 = vld [vmem:[#allocation7 + $0x4c4] sm:$0xf] }
 0x118   :  { %v3861_v2 = vld [vmem:[#allocation7 + $0x4d8] sm:$0xf0] }
 0x119   :  { %1816 = vmatpush.bf16.msrb.mxu0 %v3284_v30  ;;  %v3552_v30 = vor.u32 %v4675_v15, %v3549_v16  ;;  %v4789_v15 = vld [vmem:[#allocation7 + $0x5e4] sm:$0xf]  ;;  %v4005_v16 = vld [vmem:[#allocation7 + $0x5f8] sm:$0xf0] }
 0x11a   :  { %1829 = vmatpush.bf16.msrb.mxu1 %v3476_v24  ;;  %1790 = vmatpush.bf16.msra.mxu2 %v3664_v35  ;;  %v3931_v24 = vld [vmem:[#allocation7 + $0x550] sm:$0xf]  ;;  %v3336_v35 = vor.u32 %v4621_v26, %v3333_v27  ;;  %v3981_v26 = vld [vmem:[#allocation7 + $0x5c8] sm:$0xf0]  ;;  %v630_v27 = vperm.slane %v5372_v20, 0 }
 0x11b   :  { %1803 = vmatpush.bf16.msra.mxu3 %v3856_v36  ;;  %v3932_v32 = vor.u32 %v4774_v25, %v3931_v24  ;;  %v3528_v36 = vor.u32 %v4669_v28, %v3525_v29  ;;  %v3789_v24 = vld [vmem:[#allocation7 + $0x448] sm:$0xf0]  ;;  %v4783_v25 = vld [vmem:[#allocation7 + $0x5b4] sm:$0xf] }
 0x11c   :  { %v3984_v29 = vor.u32 %v4783_v25, %v3981_v26 }
 0x11d   :  { %1817 = vmatpush.bf16.msrb.mxu0 %v3260_v38  ;;  %v4768_v38 = vld [vmem:[#allocation7 + $0x534] sm:$0xf0] }
 0x11e   :  { %1830 = vmatpush.bf16.msrb.mxu1 %v3452_v39  ;;  %1791 = vmatpush.bf16.msra.mxu2 %v3640_v52  ;;  %v4615_v39 = vld [vmem:[#allocation7 + $0x74] sm:$0xf]  ;;  %v4762_v52 = vld [vmem:[#allocation7 + $0x504] sm:$0xf0] }
 0x11f   :  { %1804 = vmatpush.bf16.msra.mxu3 %v3832_v53  ;;  %v3312_v49 = vor.u32 %v4615_v39, %v3309_v40  ;;  %v4609_v53 = vld [vmem:[#allocation7 + $0x44] sm:$0xf]  ;;  %v4723_v39 = vld [vmem:[#allocation7 + $0x3d4] sm:$0xf]  ;;  %v3741_v40 = vld [vmem:[#allocation7 + $0x3e8] sm:$0xf0] }
 0x120   :  { %1818 = vmatmul.bf16.vlgmr.msrb.gmra.mxu0 %v5342_v17 }
 0x121   :  { %1862 = vmatpush.bf16.msra.mxu0 %v3432_v44  ;;  %1831 = vmatmul.bf16.vlgmr.msrb.gmra.mxu1 %v5344_v22  ;;  %v3716_v44 = vor.u32 %v4720_v34, %v3715_v33  ;;  %v3765_v33 = vld [vmem:[#allocation7 + $0x418] sm:$0xf0]  ;;  %v4777_v34 = vld [vmem:[#allocation7 + $0x584] sm:$0xf] }
 0x122   :  { %1875 = vmatpush.bf16.msra.mxu1 %v3624_v45  ;;  %1836 = vmatpush.bf16.msrb.mxu2 %v3812_v57  ;;  %v3908_v45 = vor.u32 %v4768_v38, %v3907_v37  ;;  %v3692_v57 = vor.u32 %v4714_v48, %v3691_v47  ;;  %v4717_v47 = vld [vmem:[#allocation7 + $0x3a4] sm:$0xf] }
 0x123   :  { %1849 = vmatpush.bf16.msrb.mxu3 %v4004_v58  ;;  %1792 = vmatmul.bf16.vlgmr.msra.gmra.mxu2 %v5354_v41  ;;  %v3884_v58 = vor.u32 %v4762_v52, %v3883_v51  ;;  %v3909_v51 = vld [vmem:[#allocation7 + $0x538] sm:$0xf0] }
 0x124   :  { %1805 = vmatmul.bf16.vlgmr.msra.gmra.mxu3 %v5356_v46 }
 0x125   :  { %1863 = vmatpush.bf16.msra.mxu0 %v3408_v61  ;;  %v3288_v61 = vor.u32 %v4609_v53, %v3285_v54 }
 0x126   :  { %1876 = vmatpush.bf16.msra.mxu1 %v3600_v62  ;;  %1837 = vmatpush.bf16.msrb.mxu2 %v3788_v5  ;;  %v3480_v62 = vor.u32 %v4657_v55, %v3477_v56  ;;  %v3668_v5 = vor.u32 %v4708_v60, %v3667_v59  ;;  %v4711_v55 = vld [vmem:[#allocation7 + $0x374] sm:$0xf]  ;;  %v3693_v56 = vld [vmem:[#allocation7 + $0x388] sm:$0xf0]  ;;  %v631_v59 = vperm.slane %v5372_v20, 1 }
 0x127   :  { %1850 = vmatpush.bf16.msrb.mxu3 %v3980_v6  ;;  %v3860_v6 = vor.u32 %v4756_v0, %v3859_v63  ;;  %v3696_v60 = vor.u32 %v4711_v55, %v3693_v56  ;;  %v3669_v0 = vld [vmem:[#allocation7 + $0x358] sm:$0xf0] }
 0x128   :  { %v4077_v56 = vld [vmem:[#allocation10 + $0x90] sm:$0xf0] }
 0x129   :  { %1864 = vmatpush.bf16.msra.mxu0 %v3384_v9  ;;  %v3456_v9 = vor.u32 %v4651_v3, %v3453_v4 }
 0x12a   :  { %1877 = vmatpush.bf16.msra.mxu1 %v3576_v10  ;;  %1838 = vmatpush.bf16.msrb.mxu2 %v3764_v18  ;;  %v4702_v10 = vld [vmem:[#allocation7 + $0x324] sm:$0xf0] }
 0x12b   :  { %1851 = vmatpush.bf16.msrb.mxu3 %v3956_v19  ;;  %v3644_v18 = vor.u32 %v4702_v10, %v3643_v7  ;;  %v3836_v19 = vor.u32 %v4750_v12, %v3835_v11  ;;  %v3864_v7 = vor.u32 %v4753_v1, %v3861_v2  ;;  %v4747_v10 = vld [vmem:[#allocation7 + $0x494] sm:$0xf]  ;;  %v3837_v11 = vld [vmem:[#allocation7 + $0x4a8] sm:$0xf0] }
 0x12c   :  { %v3840_v13 = vor.u32 %v4747_v10, %v3837_v11  ;;  %v4855_v2 = vld [vmem:[#allocation10 + $0x1ec] sm:$0xf0] }
 0x12d   :  { %1865 = vmatpush.bf16.msra.mxu0 %v3360_v23  ;;  %v4008_v23 = vor.u32 %v4789_v15, %v4005_v16  ;;  %v632_v16 = vperm.slane %v5372_v20, 2  ;;  %v4851_v11 = vld [vmem:[#allocation10 + $0x1cc] sm:$0xf0] }
 0x12e   :  { %1878 = vmatpush.bf16.msra.mxu1 %v3552_v30  ;;  %1839 = vmatpush.bf16.msrb.mxu2 %v3740_v31  ;;  %v4735_v30 = vld [vmem:[#allocation7 + $0x434] sm:$0xf]  ;;  %v4729_v31 = vld [vmem:[#allocation7 + $0x404] sm:$0xf] }
 0x12f   :  { %1852 = vmatpush.bf16.msrb.mxu3 %v3932_v32  ;;  %v3792_v28 = vor.u32 %v4735_v30, %v3789_v24  ;;  %v3768_v38 = vor.u32 %v4729_v31, %v3765_v33  ;;  %v4823_v33 = vld [vmem:[#allocation10 + $0xec] sm:$0xf0] }
 0x131   :  { %1866 = vmatpush.bf16.msra.mxu0 %v3336_v35  ;;  %v3957_v35 = vld [vmem:[#allocation7 + $0x598] sm:$0xf0] }
 0x132   :  { %1879 = vmatpush.bf16.msra.mxu1 %v3528_v36  ;;  %1840 = vmatpush.bf16.msrb.mxu2 %v3716_v44  ;;  %v3744_v44 = vor.u32 %v4723_v39, %v3741_v40  ;;  %v4091_v40 = vld [vmem:[#allocation10 + $0xa0] sm:$0xf] }
 0x133   :  { %1853 = vmatpush.bf16.msrb.mxu3 %v3908_v45  ;;  %v3936_v45 = vor.u32 %v4771_v42, %v3933_v43  ;;  %v4815_v42 = vld [vmem:[#allocation10 + $0xac] sm:$0xf0]  ;;  %v4813_v43 = vld [vmem:[#allocation10 + $0xa4] sm:$0xf] }
 0x135   :  { %1867 = vmatpush.bf16.msra.mxu0 %v3312_v49  ;;  %v3717_v49 = vld [vmem:[#allocation7 + $0x3b8] sm:$0xf0] }
 0x136   :  { %1880 = vmatpush.bf16.msra.mxu1 %v3504_v50  ;;  %1841 = vmatpush.bf16.msrb.mxu2 %v3692_v57  ;;  %v4765_v50 = vld [vmem:[#allocation7 + $0x524] sm:$0xf]  ;;  %v3720_v53 = vor.u32 %v4717_v47, %v3717_v49  ;;  %v4759_v57 = vld [vmem:[#allocation7 + $0x4f4] sm:$0xf]  ;;  %v4092_v49 = vor.u32 %v4815_v42, %v4091_v40  ;;  %v4253_v40 = vld [vmem:[#allocation10 + $0x1f0] sm:$0xf0] }
 0x137   :  { %1854 = vmatpush.bf16.msrb.mxu3 %v3884_v58  ;;  %v3912_v54 = vor.u32 %v4765_v50, %v3909_v51  ;;  %v3885_v58 = vld [vmem:[#allocation7 + $0x508] sm:$0xf0] }
 0x139   :  { %1868 = vmatpush.bf16.msra.mxu0 %v3288_v61  ;;  %v3888_v61 = vor.u32 %v4759_v57, %v3885_v58 }
 0x13a   :  { %1881 = vmatpush.bf16.msra.mxu1 %v3480_v62  ;;  %1842 = vmatpush.bf16.msrb.mxu2 %v3668_v5  ;;  %v4705_v62 = vld [vmem:[#allocation7 + $0x344] sm:$0xf] }
 0x13b   :  { %1855 = vmatpush.bf16.msrb.mxu3 %v3860_v6  ;;  %v3672_v6 = vor.u32 %v4705_v62, %v3669_v0  ;;  %v4059_v62 = vld [vmem:[#allocation10 + $0x60] sm:$0xf] }
 0x13c   :  { %v4251_v0 = vld [vmem:[#allocation10 + $0x1e0] sm:$0xf] }
 0x13d   :  { %1869 = vmatpush.bf16.msra.mxu0 %v3264_v8  ;;  %v1611_v32 = vpop.f32.mrf.mxu0  ;;  %v4699_v8 = vld [vmem:[#allocation7 + $0x314] sm:$0xf] }
 0x13e   :  { %1882 = vmatpush.bf16.msra.mxu1 %v3456_v9  ;;  %1843 = vmatpush.bf16.msrb.mxu2 %v3644_v18  ;;  %v1612_v36 = vadd.f32 %v1611_v32, %v630_v27  ;;  %v1624_v37 = vpop.f32.mrf.mxu1  ;;  %v3645_v9 = vld [vmem:[#allocation7 + $0x328] sm:$0xf0]  ;;  %v4123_v32 = vld [vmem:[#allocation10 + $0xe0] sm:$0xf] }
 0x13f   :  { %1856 = vmatpush.bf16.msrb.mxu3 %v3836_v19  ;;  %v3648_v12 = vor.u32 %v4699_v8, %v3645_v9  ;;  %v4803_v8 = vld [vmem:[#allocation10 + $0x4c] sm:$0xf0]  ;;  %v4235_v9 = vld [vmem:[#allocation10 + $0x1c0] sm:$0xf] }
 0x140   :  { %1870 = vmatmul.bf16.vlgmr.msra.gmra.mxu0 %v5342_v17  ;;  %v1625_v17 = vadd.f32 %v1624_v37, %v1612_v36  ;;  %v4819_v36 = vld [vmem:[#allocation10 + $0xcc] sm:$0xf0] }
 0x141   :  { %1883 = vmatmul.bf16.vlgmr.msra.gmra.mxu1 %v5344_v22  ;;  %1844 = vmatmul.bf16.vlgmr.msrb.gmra.mxu2 %v5354_v41  ;;  %v3960_v22 = vor.u32 %v4777_v34, %v3957_v35  ;;  %v4821_v34 = vld [vmem:[#allocation10 + $0xe4] sm:$0xf]  ;;  %v4125_v35 = vld [vmem:[#allocation10 + $0xf0] sm:$0xf0] }
 0x142   :  { %1888 = vmatpush.bf16.msra.mxu2 %v3816_v21  ;;  %1857 = vmatmul.bf16.vlgmr.msrb.gmra.mxu3 %v5356_v46  ;;  %v4128_v37 = vor.u32 %v4821_v34, %v4125_v35  ;;  %v4011_v35 = vld [vmem:[#allocation10] sm:$0xf] }
 0x143   :  { %1901 = vmatpush.bf16.msra.mxu3 %v4008_v23 }
 0x145   :  { %v1613_v48 = vpop.f32.mrf.mxu0 }
 0x146   :  { %1889 = vmatpush.bf16.msra.mxu2 %v3792_v28  ;;  %v1626_v52 = vpop.f32.mrf.mxu1 }
 0x147   :  { %1902 = vmatpush.bf16.msra.mxu3 %v3984_v29  ;;  %v4075_v52 = vld [vmem:[#allocation10 + $0x80] sm:$0xf] }
 0x14a   :  { %1890 = vmatpush.bf16.msra.mxu2 %v3768_v38  ;;  %v4817_v38 = vld [vmem:[#allocation10 + $0xc4] sm:$0xf] }
 0x14b   :  { %1903 = vmatpush.bf16.msra.mxu3 %v3960_v22  ;;  %v4109_v22 = vld [vmem:[#allocation10 + $0xd0] sm:$0xf0] }
 0x14d   :  { %v1663_v63 = vpop.f32.mrf.mxu0 }
 0x14e   :  { %1891 = vmatpush.bf16.msra.mxu2 %v3744_v44  ;;  %v1664_v3 = vadd.f32 %v1663_v63, %v631_v59  ;;  %v1676_v4 = vpop.f32.mrf.mxu1  ;;  %v4093_v44 = vld [vmem:[#allocation10 + $0xb0] sm:$0xf0]  ;;  %v4807_v63 = vld [vmem:[#allocation10 + $0x6c] sm:$0xf0] }
 0x14f   :  { %1904 = vmatpush.bf16.msra.mxu3 %v3936_v45  ;;  %v4096_v50 = vor.u32 %v4813_v43, %v4093_v44  ;;  %v4060_v1 = vor.u32 %v4807_v63, %v4059_v62  ;;  %v4259_v44 = vld [vmem:[#allocation10 + $0x1e8] sm:$0xf]  ;;  %v4852_v63 = vld [vmem:[#allocation10 + $0x1d4] sm:$0xf0] }
 0x150   :  { %v1677_v5 = vadd.f32 %v1676_v4, %v1664_v3  ;;  %v4805_v3 = vld [vmem:[#allocation10 + $0x64] sm:$0xf]  ;;  %v4061_v4 = vld [vmem:[#allocation10 + $0x70] sm:$0xf0]  ;;  %v4243_v62 = vld [vmem:[#allocation10 + $0x1c8] sm:$0xf] }
 0x152   :  { %1892 = vmatpush.bf16.msra.mxu2 %v3720_v53  ;;  %v4811_v53 = vld [vmem:[#allocation10 + $0x8c] sm:$0xf0] }
 0x153   :  { %1905 = vmatpush.bf16.msra.mxu3 %v3912_v54  ;;  %v4809_v54 = vld [vmem:[#allocation10 + $0x84] sm:$0xf]  ;;  %v4076_v55 = vor.u32 %v4811_v53, %v4075_v52  ;;  %v4839_v52 = vld [vmem:[#allocation10 + $0x16c] sm:$0xf0]  ;;  %v4379_v53 = vld [vmem:[#allocation10 + $0x2e0] sm:$0xf] }
 0x154   :  { %v4080_v58 = vor.u32 %v4809_v54, %v4077_v56  ;;  %v4849_v56 = vld [vmem:[#allocation10 + $0x1c4] sm:$0xf] }
 0x155   :  { %v1665_v14 = vpop.f32.mrf.mxu0 }
 0x156   :  { %1893 = vmatpush.bf16.msra.mxu2 %v3696_v60  ;;  %v1678_v15 = vpop.f32.mrf.mxu1  ;;  %v4236_v14 = vor.u32 %v4851_v11, %v4235_v9  ;;  %v4227_v9 = vld [vmem:[#allocation10 + $0x1a8] sm:$0xf]  ;;  %v4848_v11 = vld [vmem:[#allocation10 + $0x1b4] sm:$0xf0] }
 0x157   :  { %1906 = vmatpush.bf16.msra.mxu3 %v3888_v61 }
 0x15a   :  { %1894 = vmatpush.bf16.msra.mxu2 %v3672_v6  ;;  %v4064_v6 = vor.u32 %v4805_v3, %v4061_v4  ;;  %v4363_v3 = vld [vmem:[#allocation10 + $0x2c0] sm:$0xf]  ;;  %v4883_v4 = vld [vmem:[#allocation10 + $0x2cc] sm:$0xf0] }
 0x15b   :  { %1907 = vmatpush.bf16.msra.mxu3 %v3864_v7  ;;  %v4043_v7 = vld [vmem:[#allocation10 + $0x40] sm:$0xf] }
 0x15c   :  { %v4044_v10 = vor.u32 %v4803_v8, %v4043_v7  ;;  %v4845_v7 = vld [vmem:[#allocation10 + $0x1a4] sm:$0xf]  ;;  %v4221_v8 = vld [vmem:[#allocation10 + $0x1b0] sm:$0xf0] }
 0x15d   :  { %v1715_v18 = vpop.f32.mrf.mxu0 }
 0x15e   :  { %1895 = vmatpush.bf16.msra.mxu2 %v3648_v12  ;;  %v1716_v19 = vadd.f32 %v1715_v18, %v632_v16  ;;  %v4801_v12 = vld [vmem:[#allocation10 + $0x44] sm:$0xf] }
 0x15f   :  { %1908 = vmatpush.bf16.msra.mxu3 %v3840_v13  ;;  %v4045_v13 = vld [vmem:[#allocation10 + $0x50] sm:$0xf0] }
 0x160   :  { %v1728_v21 = vpop.f32.mrf.mxu1  ;;  %v4048_v15 = vor.u32 %v4801_v12, %v4045_v13  ;;  %v4228_v12 = vor.u32 %v4848_v11, %v4227_v9  ;;  %v4155_v13 = vld [vmem:[#allocation10 + $0x120] sm:$0xf]  ;;  %v4349_v9 = vld [vmem:[#allocation10 + $0x2b0] sm:$0xf0]  ;;  %v4832_v11 = vld [vmem:[#allocation10 + $0x134] sm:$0xf0] }
 0x161   :  { %1896 = vmatmul.bf16.vlgmr.msra.gmra.mxu2 %v5354_v41  ;;  %v5383_v23 = vadd.f32 %v1728_v21, %v1716_v19  ;;  %v4124_v41 = vor.u32 %v4823_v33, %v4123_v32  ;;  %v4029_v32 = vld [vmem:[#allocation10 + $0x30] sm:$0xf0] }
 0x162   :  { %1909 = vmatmul.bf16.vlgmr.msra.gmra.mxu3 %v5356_v46  ;;  %v4107_v46 = vld [vmem:[#allocation10 + $0xc0] sm:$0xf] }
 0x163   :  { %v1637_v30 = vpop.f32.mrf.mxu2  ;;  %2512 = vmatpush.bf16.msrb.mxu0 %v4124_v41  ;;  %v4108_v39 = vor.u32 %v4819_v36, %v4107_v46  ;;  %2551 = vmatpush.bf16.msrb.mxu3 %v4128_v37  ;;  %v4795_v46 = vld [vmem:[#allocation10 + $0xc] sm:$0xf0]  ;;  %v4203_v36 = vld [vmem:[#allocation10 + $0x180] sm:$0xf] }
 0x164   :  { %v1638_v24 = vadd.f32 %v1637_v30, %v1625_v17  ;;  %v1650_v25 = vpop.f32.mrf.mxu3  ;;  %v4112_v17 = vor.u32 %v4817_v38, %v4109_v22  ;;  %v4027_v30 = vld [vmem:[#allocation10 + $0x20] sm:$0xf]  ;;  %v4012_v37 = vor.u32 %v4795_v46, %v4011_v35  ;;  %v4843_v38 = vld [vmem:[#allocation10 + $0x18c] sm:$0xf0]  ;;  %v4793_v22 = vld [vmem:[#allocation10 + $0x4] sm:$0xf] }
 0x165   :  { %v1717_v26 = vpop.f32.mrf.mxu0 }
 0x166   :  { %v5385_v27 = vadd.f32 %v1650_v25, %v1638_v24  ;;  %v4799_v24 = vld [vmem:[#allocation10 + $0x2c] sm:$0xf0]  ;;  %v4219_v25 = vld [vmem:[#allocation10 + $0x1a0] sm:$0xf] }
 0x167   :  { %2513 = vmatpush.bf16.msrb.mxu0 %v4108_v39  ;;  %2552 = vmatpush.bf16.msrb.mxu3 %v4112_v17  ;;  %v4204_v39 = vor.u32 %v4843_v38, %v4203_v36  ;;  %v4013_v17 = vld [vmem:[#allocation10 + $0x10] sm:$0xf0]  ;;  %v4875_v36 = vld [vmem:[#allocation10 + $0x28c] sm:$0xf0] }
 0x168   :  { %v1730_v28 = vpop.f32.mrf.mxu1  ;;  %v4016_v42 = vor.u32 %v4793_v22, %v4013_v17  ;;  %v4189_v38 = vld [vmem:[#allocation10 + $0x170] sm:$0xf0]  ;;  %v4885_v17 = vld [vmem:[#allocation10 + $0x2e4] sm:$0xf] }
 0x169   :  { %v4028_v28 = vor.u32 %v4799_v24, %v4027_v30 }
 0x16b   :  { %v1639_v29 = vpop.f32.mrf.mxu2  ;;  %2514 = vmatpush.bf16.msrb.mxu0 %v4092_v49  ;;  %2553 = vmatpush.bf16.msrb.mxu3 %v4096_v50  ;;  %v4187_v50 = vld [vmem:[#allocation10 + $0x160] sm:$0xf] }
 0x16c   :  { %v1652_v31 = vpop.f32.mrf.mxu3  ;;  %v4847_v29 = vld [vmem:[#allocation10 + $0x1ac] sm:$0xf0]  ;;  %v4188_v54 = vor.u32 %v4839_v52, %v4187_v50  ;;  %v4833_v50 = vld [vmem:[#allocation10 + $0x144] sm:$0xf]  ;;  %v4173_v52 = vld [vmem:[#allocation10 + $0x150] sm:$0xf0] }
 0x16d   :  { %v4797_v31 = vld [vmem:[#allocation10 + $0x24] sm:$0xf]  ;;  %v4220_v33 = vor.u32 %v4847_v29, %v4219_v25  ;;  %v4211_v25 = vld [vmem:[#allocation10 + $0x188] sm:$0xf] }
 0x16e   :  { %v4032_v34 = vor.u32 %v4797_v31, %v4029_v32  ;;  %v4139_v31 = vld [vmem:[#allocation10 + $0x100] sm:$0xf]  ;;  %v4827_v32 = vld [vmem:[#allocation10 + $0x10c] sm:$0xf0] }
 0x16f   :  { %2515 = vmatpush.bf16.msrb.mxu0 %v4076_v55  ;;  %2554 = vmatpush.bf16.msrb.mxu3 %v4080_v58  ;;  %v4887_v55 = vld [vmem:[#allocation10 + $0x2ec] sm:$0xf0]  ;;  %v4140_v46 = vor.u32 %v4827_v32, %v4139_v31 }
 0x170   :  { %v4380_v58 = vor.u32 %v4887_v55, %v4379_v53  ;;  %v4881_v53 = vld [vmem:[#allocation10 + $0x2c4] sm:$0xf]  ;;  %v4365_v55 = vld [vmem:[#allocation10 + $0x2d0] sm:$0xf0] }
 0x172   :  { %2538 = vmatpush.bf16.msrb.mxu2 %v4380_v58  ;;  %v4368_v58 = vor.u32 %v4881_v53, %v4365_v55  ;;  %v4884_v53 = vld [vmem:[#allocation10 + $0x2d4] sm:$0xf0]  ;;  %v4882_v55 = vld [vmem:[#allocation10 + $0x2cc] sm:$0xf] }
 0x173   :  { %v1689_v45 = vpop.f32.mrf.mxu2  ;;  %2516 = vmatpush.bf16.msrb.mxu0 %v4060_v1  ;;  %2555 = vmatpush.bf16.msrb.mxu3 %v4064_v6  ;;  %v4244_v1 = vor.u32 %v4852_v63, %v4243_v62  ;;  %v4364_v6 = vor.u32 %v4883_v4, %v4363_v3  ;;  %v4299_v62 = vld [vmem:[#allocation10 + $0x240] sm:$0xf]  ;;  %v4867_v63 = vld [vmem:[#allocation10 + $0x24c] sm:$0xf0]  ;;  %v4829_v3 = vld [vmem:[#allocation10 + $0x124] sm:$0xf] }
 0x174   :  { %v1690_v47 = vadd.f32 %v1689_v45, %v1677_v5  ;;  %v1702_v48 = vpop.f32.mrf.mxu3  ;;  %v4252_v5 = vor.u32 %v4855_v2, %v4251_v0  ;;  %v4856_v45 = vld [vmem:[#allocation10 + $0x1f4] sm:$0xf0]  ;;  %v4171_v0 = vld [vmem:[#allocation10 + $0x140] sm:$0xf]  ;;  %v4835_v2 = vld [vmem:[#allocation10 + $0x14c] sm:$0xf0] }
 0x175   :  { %v4260_v49 = vor.u32 %v4856_v45, %v4259_v44  ;;  %v4315_v45 = vld [vmem:[#allocation10 + $0x260] sm:$0xf]  ;;  %v4157_v4 = vld [vmem:[#allocation10 + $0x130] sm:$0xf0] }
 0x176   :  { %v5387_v51 = vadd.f32 %v1702_v48, %v1690_v47  ;;  %2525 = vmatpush.bf16.msrb.mxu1 %v4252_v5  ;;  %v4172_v5 = vor.u32 %v4835_v2, %v4171_v0  ;;  %2539 = vmatpush.bf16.msrb.mxu2 %v4364_v6  ;;  %v4300_v2 = vor.u32 %v4867_v63, %v4299_v62  ;;  %v4820_v62 = vld [vmem:[#allocation10 + $0xd4] sm:$0xf0] }
 0x177   :  { %2517 = vmatpush.bf16.msrb.mxu0 %v4044_v10  ;;  %2556 = vmatpush.bf16.msrb.mxu3 %v4048_v15  ;;  %v4224_v10 = vor.u32 %v4845_v7, %v4221_v8  ;;  %v4347_v15 = vld [vmem:[#allocation10 + $0x2a0] sm:$0xf]  ;;  %v4160_v8 = vor.u32 %v4829_v3, %v4157_v4  ;;  %v4878_v4 = vld [vmem:[#allocation10 + $0x2ac] sm:$0xf] }
 0x17a   :  { %2526 = vmatpush.bf16.msrb.mxu1 %v4236_v14  ;;  %v4831_v14 = vld [vmem:[#allocation10 + $0x12c] sm:$0xf0] }
 0x17b   :  { %v1691_v57 = vpop.f32.mrf.mxu2  ;;  %2518 = vmatpush.bf16.msrb.mxu0 %v4028_v28  ;;  %2557 = vmatpush.bf16.msrb.mxu3 %v4032_v34  ;;  %v633_v28 = vperm.slane %v5372_v20, 3 }
 0x17c   :  { %v1704_v61 = vpop.f32.mrf.mxu3  ;;  %v4237_v57 = vld [vmem:[#allocation10 + $0x1d0] sm:$0xf0] }
 0x17d   :  { %v5389_v59 = vpop.f32.mrf.mxu0  ;;  %v4240_v61 = vor.u32 %v4849_v56, %v4237_v57  ;;  %v4179_v56 = vld [vmem:[#allocation10 + $0x148] sm:$0xf]  ;;  %v4836_v57 = vld [vmem:[#allocation10 + $0x154] sm:$0xf0] }
 0x17e   :  { %v5391_v60 = vpop.f32.mrf.mxu1  ;;  %2527 = vmatpush.bf16.msrb.mxu1 %v4220_v33  ;;  %v4331_v33 = vld [vmem:[#allocation10 + $0x280] sm:$0xf] }
 0x17f   :  { %2519 = vmatpush.bf16.msrb.mxu0 %v4012_v37  ;;  %2558 = vmatpush.bf16.msrb.mxu3 %v4016_v42  ;;  %v4837_v37 = vld [vmem:[#allocation10 + $0x164] sm:$0xf]  ;;  %v4332_v22 = vor.u32 %v4875_v36, %v4331_v33  ;;  %v4888_v36 = vld [vmem:[#allocation10 + $0x2f4] sm:$0xf0] }
 0x182   :  { %2528 = vmatpush.bf16.msrb.mxu1 %v4204_v39  ;;  %v4192_v39 = vor.u32 %v4837_v37, %v4189_v38  ;;  %v4886_v37 = vld [vmem:[#allocation10 + $0x2ec] sm:$0xf]  ;;  %v4389_v38 = vld [vmem:[#allocation10 + $0x2f8] sm:$0xf0] }
 0x183   :  { %2603 = vmatpush.bf16.msra.mxu3 %v4260_v49 }
 0x185   :  { %v1769_v16 = vpop.f32.mrf.mxu0 }
 0x186   :  { %v1782_v18 = vpop.f32.mrf.mxu1  ;;  %v1741_v19 = vpop.f32.mrf.mxu2  ;;  %2529 = vmatpush.bf16.msrb.mxu1 %v4188_v54  ;;  %v4156_v16 = vor.u32 %v4831_v14, %v4155_v13  ;;  %v4176_v54 = vor.u32 %v4833_v50, %v4173_v52  ;;  %v4824_v50 = vld [vmem:[#allocation10 + $0xf4] sm:$0xf0]  ;;  %v4371_v52 = vld [vmem:[#allocation10 + $0x2c8] sm:$0xf] }
 0x187   :  { %v1754_v21 = vpop.f32.mrf.mxu3  ;;  %v1742_v26 = vadd.f32 %v1741_v19, %v5383_v23  ;;  %v4853_v23 = vld [vmem:[#allocation10 + $0x1e4] sm:$0xf]  ;;  %2604 = vmatpush.bf16.msra.mxu3 %v4244_v1  ;;  %v4879_v18 = vld [vmem:[#allocation10 + $0x2ac] sm:$0xf0]  ;;  %v4372_v63 = vor.u32 %v4884_v53, %v4371_v52 }
 0x188   :  { %v4256_v43 = vor.u32 %v4853_v23, %v4253_v40  ;;  %v4841_v19 = vld [vmem:[#allocation10 + $0x184] sm:$0xf]  ;;  %v4348_v30 = vor.u32 %v4879_v18, %v4347_v15  ;;  %v4381_v23 = vld [vmem:[#allocation10 + $0x2f0] sm:$0xf0]  ;;  %v4195_v40 = vld [vmem:[#allocation10 + $0x168] sm:$0xf] }
 0x189   :  { %v5394_v41 = vadd.f32 %v1754_v21, %v1742_v26  ;;  %v4205_v21 = vld [vmem:[#allocation10 + $0x190] sm:$0xf0]  ;;  %v4844_v26 = vld [vmem:[#allocation10 + $0x194] sm:$0xf0]  ;;  %v4384_v42 = vor.u32 %v4885_v17, %v4381_v23  ;;  %v4863_v15 = vld [vmem:[#allocation10 + $0x22c] sm:$0xf0] }
 0x18a   :  { %2564 = vmatpush.bf16.msra.mxu0 %v4256_v43  ;;  %2530 = vmatpush.bf16.msrb.mxu1 %v4172_v5  ;;  %v4208_v24 = vor.u32 %v4841_v19, %v4205_v21  ;;  %v4212_v29 = vor.u32 %v4844_v26, %v4211_v25  ;;  %v4840_v43 = vld [vmem:[#allocation10 + $0x174] sm:$0xf0]  ;;  %v4877_v5 = vld [vmem:[#allocation10 + $0x2a4] sm:$0xf]  ;;  %v4141_v21 = vld [vmem:[#allocation10 + $0x110] sm:$0xf0] }
 0x18b   :  { %2605 = vmatpush.bf16.msra.mxu3 %v4228_v12  ;;  %2540 = vmatpush.bf16.msrb.mxu2 %v4348_v30  ;;  %v4196_v44 = vor.u32 %v4840_v43, %v4195_v40  ;;  %v4352_v13 = vor.u32 %v4877_v5, %v4349_v9  ;;  %v4825_v19 = vld [vmem:[#allocation10 + $0x104] sm:$0xf]  ;;  %v4333_v25 = vld [vmem:[#allocation10 + $0x290] sm:$0xf0]  ;;  %v4147_v26 = vld [vmem:[#allocation10 + $0x108] sm:$0xf]  ;;  %v4392_v43 = vor.u32 %v4886_v37, %v4389_v38 }
 0x18c   :  { %v4873_v30 = vld [vmem:[#allocation10 + $0x284] sm:$0xf]  ;;  %v4859_v17 = vld [vmem:[#allocation10 + $0x20c] sm:$0xf0]  ;;  %v4357_v5 = vld [vmem:[#allocation10 + $0x2b8] sm:$0xf0] }
 0x18d   :  { %v4336_v32 = vor.u32 %v4873_v30, %v4333_v25  ;;  %v4816_v9 = vld [vmem:[#allocation10 + $0xb4] sm:$0xf0]  ;;  %v4325_v37 = vld [vmem:[#allocation10 + $0x278] sm:$0xf0]  ;;  %v4067_v38 = vld [vmem:[#allocation10 + $0x68] sm:$0xf] }
 0x18e   :  { %v1743_v47 = vpop.f32.mrf.mxu2  ;;  %2565 = vmatpush.bf16.msra.mxu0 %v4240_v61  ;;  %2531 = vmatpush.bf16.msrb.mxu1 %v4156_v16  ;;  %v4180_v61 = vor.u32 %v4836_v57, %v4179_v56  ;;  %v4373_v56 = vld [vmem:[#allocation10 + $0x2d8] sm:$0xf0]  ;;  %v4865_v57 = vld [vmem:[#allocation10 + $0x244] sm:$0xf]  ;;  %v4812_v30 = vld [vmem:[#allocation10 + $0x94] sm:$0xf0] }
 0x18f   :  { %v1756_v48 = vpop.f32.mrf.mxu3  ;;  %2606 = vmatpush.bf16.msra.mxu3 %v4212_v29  ;;  %2541 = vmatpush.bf16.msrb.mxu2 %v4332_v22  ;;  %v4871_v47 = vld [vmem:[#allocation10 + $0x26c] sm:$0xf0]  ;;  %v1914_v29 = vmax.f32 %v5385_v27, 0.0  ;;  %v4267_v22 = vld [vmem:[#allocation10 + $0x200] sm:$0xf] }
 0x190   :  { %v1768_v48 = vadd.f32 %v5389_v59, %v633_v28  ;;  %v4316_v49 = vor.u32 %v4871_v47, %v4315_v45  ;;  %v4828_v28 = vld [vmem:[#allocation10 + $0x114] sm:$0xf0]  ;;  %v4869_v27 = vld [vmem:[#allocation10 + $0x264] sm:$0xf]  ;;  %v4317_v45 = vld [vmem:[#allocation10 + $0x270] sm:$0xf0] }
 0x191   :  { %v4148_v33 = vor.u32 %v4828_v28, %v4147_v26  ;;  %v4131_v47 = vld [vmem:[#allocation10 + $0xe8] sm:$0xf] }
 0x192   :  { %2566 = vmatpush.bf16.msra.mxu0 %v4224_v10  ;;  %2532 = vmatpush.bf16.msrb.mxu1 %v4140_v46  ;;  %v1781_v0 = vadd.f32 %v5391_v60, %v1768_v48  ;;  %v4163_v10 = vld [vmem:[#allocation10 + $0x128] sm:$0xf]  ;;  %v4283_v60 = vld [vmem:[#allocation10 + $0x220] sm:$0xf] }
 0x193   :  { %2607 = vmatpush.bf16.msra.mxu3 %v4196_v44  ;;  %2542 = vmatpush.bf16.msrb.mxu2 %v4316_v49  ;;  %v4164_v14 = vor.u32 %v4832_v11, %v4163_v10  ;;  %v4284_v18 = vor.u32 %v4863_v15, %v4283_v60  ;;  %v4387_v46 = vld [vmem:[#allocation10 + $0x2e8] sm:$0xf]  ;;  %v4268_v44 = vor.u32 %v4859_v17, %v4267_v22  ;;  %v4874_v15 = vld [vmem:[#allocation10 + $0x28c] sm:$0xf]  ;;  %v4808_v22 = vld [vmem:[#allocation10 + $0x74] sm:$0xf0] }
 0x194   :  { %v4320_v49 = vor.u32 %v4869_v27, %v4317_v45  ;;  %v4360_v11 = vor.u32 %v4878_v4, %v4357_v5  ;;  %v4323_v28 = vld [vmem:[#allocation10 + $0x268] sm:$0xf]  ;;  %v4309_v27 = vld [vmem:[#allocation10 + $0x258] sm:$0xf0]  ;;  %v4860_v5 = vld [vmem:[#allocation10 + $0x214] sm:$0xf0] }
 0x195   :  { %v4275_v4 = vld [vmem:[#allocation10 + $0x208] sm:$0xf] }
 0x196   :  { %2567 = vmatpush.bf16.msra.mxu0 %v4208_v24  ;;  %2577 = vmatpush.bf16.msra.mxu1 %v4384_v42  ;;  %v4144_v24 = vor.u32 %v4825_v19, %v4141_v21  ;;  %v4388_v42 = vor.u32 %v4888_v36, %v4387_v46  ;;  %v4269_v19 = vld [vmem:[#allocation10 + $0x210] sm:$0xf0]  ;;  %v4083_v21 = vld [vmem:[#allocation10 + $0x88] sm:$0xf]  ;;  %v4872_v46 = vld [vmem:[#allocation10 + $0x274] sm:$0xf0] }
 0x197   :  { %2608 = vmatpush.bf16.msra.mxu3 %v4180_v61  ;;  %2543 = vmatpush.bf16.msrb.mxu2 %v4300_v2  ;;  %v4115_v61 = vld [vmem:[#allocation10 + $0xc8] sm:$0xf]  ;;  %v4870_v36 = vld [vmem:[#allocation10 + $0x26c] sm:$0xf] }
 0x198   :  { %v4116_v3 = vor.u32 %v4820_v62, %v4115_v61  ;;  %v4328_v17 = vor.u32 %v4870_v36, %v4325_v37  ;;  %v4862_v61 = vld [vmem:[#allocation10 + $0x22c] sm:$0xf]  ;;  %v4293_v62 = vld [vmem:[#allocation10 + $0x238] sm:$0xf0]  ;;  %v635_v36 = vperm.slane %v5372_v20, 5 }
 0x19a   :  { %2568 = vmatpush.bf16.msra.mxu0 %v4192_v39  ;;  %2578 = vmatpush.bf16.msra.mxu1 %v4368_v58  ;;  %v4301_v58 = vld [vmem:[#allocation10 + $0x250] sm:$0xf0] }
 0x19b   :  { %2609 = vmatpush.bf16.msra.mxu3 %v4164_v14  ;;  %2544 = vmatpush.bf16.msrb.mxu2 %v4284_v18  ;;  %v4304_v2 = vor.u32 %v4865_v57, %v4301_v58  ;;  %v4857_v18 = vld [vmem:[#allocation10 + $0x204] sm:$0xf] }
 0x19d   :  { %v5397_v34 = vpop.f32.mrf.mxu0 }
 0x19e   :  { %v5399_v35 = vpop.f32.mrf.mxu1  ;;  %2569 = vmatpush.bf16.msra.mxu0 %v4176_v54  ;;  %2579 = vmatpush.bf16.msra.mxu1 %v4352_v13  ;;  %v4132_v54 = vor.u32 %v4824_v50, %v4131_v47  ;;  %v4876_v13 = vld [vmem:[#allocation10 + $0x294] sm:$0xf0] }
 0x19f   :  { %2610 = vmatpush.bf16.msra.mxu3 %v4148_v33  ;;  %2545 = vmatpush.bf16.msrb.mxu2 %v4268_v44  ;;  %v4084_v33 = vor.u32 %v4812_v30, %v4083_v21  ;;  %v4866_v44 = vld [vmem:[#allocation10 + $0x24c] sm:$0xf]  ;;  %v4804_v50 = vld [vmem:[#allocation10 + $0x54] sm:$0xf0] }
 0x1a0   :  { %v4312_v47 = vor.u32 %v4866_v44, %v4309_v27  ;;  %v4818_v30 = vld [vmem:[#allocation10 + $0xcc] sm:$0xf] }
 0x1a2   :  { %2570 = vmatpush.bf16.msra.mxu0 %v4160_v8  ;;  %2580 = vmatpush.bf16.msra.mxu1 %v4336_v32  ;;  %v4099_v8 = vld [vmem:[#allocation10 + $0xa8] sm:$0xf]  ;;  %v4272_v32 = vor.u32 %v4857_v18, %v4269_v19 }
 0x1a3   :  { %2590 = vmatpush.bf16.msra.mxu2 %v4132_v54  ;;  %v4100_v60 = vor.u32 %v4816_v9, %v4099_v8  ;;  %v1915_v8 = vmax.f32 %v5387_v51, 0.0 }
 0x1a5   :  { %v1821_v1 = vpop.f32.mrf.mxu0 }
 0x1a6   :  { %v1834_v59 = vpop.f32.mrf.mxu1  ;;  %v1793_v6 = vpop.f32.mrf.mxu2  ;;  %2571 = vmatpush.bf16.msra.mxu0 %v4144_v24  ;;  %v4355_v1 = vld [vmem:[#allocation10 + $0x2a8] sm:$0xf]  ;;  %2581 = vmatpush.bf16.msra.mxu1 %v4320_v49  ;;  %v634_v24 = vperm.slane %v5372_v20, 4 }
 0x1a7   :  { %v1806_v7 = vpop.f32.mrf.mxu3  ;;  %v1794_v12 = vadd.f32 %v1793_v6, %v1781_v0  ;;  %v4376_v0 = vor.u32 %v4882_v55, %v4373_v56  ;;  %v4880_v59 = vld [vmem:[#allocation10 + $0x2b4] sm:$0xf0]  ;;  %v4861_v6 = vld [vmem:[#allocation10 + $0x224] sm:$0xf]  ;;  %2591 = vmatpush.bf16.msra.mxu2 %v4116_v3  ;;  %v4051_v49 = vld [vmem:[#allocation10 + $0x48] sm:$0xf] }
 0x1a8   :  { %v4356_v10 = vor.u32 %v4880_v59, %v4355_v1  ;;  %v4052_v55 = vor.u32 %v4804_v50, %v4051_v49  ;;  %v4864_v56 = vld [vmem:[#allocation10 + $0x234] sm:$0xf0]  ;;  %v4296_v1 = vor.u32 %v4862_v61, %v4293_v62  ;;  %v4035_v59 = vld [vmem:[#allocation10 + $0x28] sm:$0xf] }
 0x1a9   :  { %v1807_v16 = vadd.f32 %v1806_v7, %v1794_v12  ;;  %v4285_v7 = vld [vmem:[#allocation10 + $0x230] sm:$0xf0]  ;;  %v4339_v12 = vld [vmem:[#allocation10 + $0x288] sm:$0xf] }
 0x1aa   :  { %2582 = vmatpush.bf16.msra.mxu1 %v4304_v2  ;;  %v4288_v14 = vor.u32 %v4861_v6, %v4285_v7  ;;  %v4340_v25 = vor.u32 %v4876_v13, %v4339_v12  ;;  %v4800_v2 = vld [vmem:[#allocation10 + $0x34] sm:$0xf0]  ;;  %v4858_v6 = vld [vmem:[#allocation10 + $0x20c] sm:$0xf]  ;;  %v4277_v7 = vld [vmem:[#allocation10 + $0x218] sm:$0xf0]  ;;  %v4276_v12 = vor.u32 %v4860_v5, %v4275_v4 }
 0x1ab   :  { %v1917_v31 = vmax.f32 %v1807_v16, 0.0  ;;  %v4341_v16 = vld [vmem:[#allocation10 + $0x298] sm:$0xf0]  ;;  %2592 = vmatpush.bf16.msra.mxu2 %v4100_v60  ;;  %v4280_v13 = vor.u32 %v4858_v6, %v4277_v7  ;;  %v4796_v60 = vld [vmem:[#allocation10 + $0x14] sm:$0xf0] }
 0x1ac   :  { %v4344_v26 = vor.u32 %v4874_v15, %v4341_v16  ;;  %v4838_v5 = vld [vmem:[#allocation10 + $0x16c] sm:$0xf]  ;;  %v4197_v6 = vld [vmem:[#allocation10 + $0x178] sm:$0xf0] }
 0x1ad   :  { %v1920_v39 = vmax.f32 %v1914_v29, %v1917_v31  ;;  %v4200_v7 = vor.u32 %v4838_v5, %v4197_v6 }
 0x1ae   :  { %v1795_v23 = vpop.f32.mrf.mxu2  ;;  %2583 = vmatpush.bf16.msra.mxu1 %v4288_v14  ;;  %v4019_v14 = vld [vmem:[#allocation10 + $0x8] sm:$0xf] }
 0x1af   :  { %v1808_v40 = vpop.f32.mrf.mxu3  ;;  %v5404_v48 = vpack.c.bf16 %v1920_v39, %v1920_v39  ;;  %v4324_v39 = vor.u32 %v4872_v46, %v4323_v28  ;;  %v1820_v23 = vadd.f32 %v5397_v34, %v634_v24  ;;  %2593 = vmatpush.bf16.msra.mxu2 %v4084_v33  ;;  %v4291_v34 = vld [vmem:[#allocation10 + $0x228] sm:$0xf]  ;;  %v4117_v24 = vld [vmem:[#allocation10 + $0xd8] sm:$0xf0]  ;;  %v4810_v33 = vld [vmem:[#allocation10 + $0x8c] sm:$0xf] }
 0x1b0   :  { %v4068_v40 = vor.u32 %v4808_v22, %v4067_v38  ;;  %v4120_v51 = vor.u32 %v4818_v30, %v4117_v24  ;;  %v4101_v28 = vld [vmem:[#allocation10 + $0xb8] sm:$0xf0]  ;;  %v4806_v38 = vld [vmem:[#allocation10 + $0x6c] sm:$0xf]  ;;  %v4903_v30 = vld [vmem:[#allocation12 + $0x70] sm:$0xff] }
 0x1b1   :  { %2520 = vmatmul.bf16.vlgmr.msrb.gmra.mxu0 %v5404_v48  ;;  %2559 = vmatmul.bf16.vlgmr.msrb.gmra.mxu3 %v5404_v48  ;;  %v1833_v52 = vadd.f32 %v5399_v35, %v1820_v23  ;;  %v4036_v35 = vor.u32 %v4800_v2, %v4035_v59  ;;  %v4085_v46 = vld [vmem:[#allocation10 + $0x98] sm:$0xf0]  ;;  %v4802_v23 = vld [vmem:[#allocation10 + $0x4c] sm:$0xf] }
 0x1b2   :  { %2616 = vmatpush.bf16.msrb.mxu0 %v4388_v42  ;;  %2655 = vmatpush.bf16.msrb.mxu3 %v4392_v43  ;;  %v4307_v42 = vld [vmem:[#allocation10 + $0x248] sm:$0xf]  ;;  %v4868_v43 = vld [vmem:[#allocation10 + $0x254] sm:$0xf0]  ;;  %v4088_v37 = vor.u32 %v4810_v33, %v4085_v46  ;;  %v4069_v22 = vld [vmem:[#allocation10 + $0x78] sm:$0xf0] }
 0x1b3   :  { %2584 = vmatpush.bf16.msra.mxu1 %v4272_v32  ;;  %v4308_v45 = vor.u32 %v4868_v43, %v4307_v42  ;;  %2594 = vmatpush.bf16.msra.mxu2 %v4068_v40  ;;  %v4053_v40 = vld [vmem:[#allocation10 + $0x58] sm:$0xf0]  ;;  %v4899_v46 = vld [vmem:[#allocation12 + $0x50] sm:$0xff] }
 0x1b4   :  { %v4056_v43 = vor.u32 %v4802_v23, %v4053_v40  ;;  %v4229_v59 = vld [vmem:[#allocation10 + $0x1b8] sm:$0xf0]  ;;  %v4897_v23 = vld [vmem:[#allocation12 + $0x40] sm:$0xff]  ;;  %v4890_v40 = vld [vmem:[#allocation12 + $0x8] sm:$0xff] }
 0x1b5   :  { %v4900_v33 = vld [vmem:[#allocation12 + $0x58] sm:$0xff] }
 0x1b6   :  { %2617 = vmatpush.bf16.msrb.mxu0 %v4372_v63  ;;  %2656 = vmatpush.bf16.msrb.mxu3 %v4376_v0  ;;  %v4292_v0 = vor.u32 %v4864_v56, %v4291_v34  ;;  %v4021_v34 = vld [vmem:[#allocation10 + $0x18] sm:$0xf0] }
 0x1b7   :  { %2595 = vmatpush.bf16.msra.mxu2 %v4052_v55  ;;  %v4794_v55 = vld [vmem:[#allocation10 + $0xc] sm:$0xf] }
 0x1b8   :  { %v4024_v62 = vor.u32 %v4794_v55, %v4021_v34  ;;  %v2022_v55 = vld [vmem:[%s5452_s6] sm:$0xf] }
 0x1b9   :  { %v2025_v34 = vperm.slane %v2022_v55, 1 }
 0x1ba   :  { %2618 = vmatpush.bf16.msrb.mxu0 %v4356_v10  ;;  %2657 = vmatpush.bf16.msrb.mxu3 %v4360_v11  ;;  %v4822_v10 = vld [vmem:[#allocation10 + $0xec] sm:$0xf]  ;;  %v4133_v11 = vld [vmem:[#allocation10 + $0xf8] sm:$0xf0] }
 0x1bb   :  { %2596 = vmatpush.bf16.msra.mxu2 %v4036_v35  ;;  %v4136_v19 = vor.u32 %v4822_v10, %v4133_v11  ;;  %v4213_v35 = vld [vmem:[#allocation10 + $0x198] sm:$0xf0]  ;;  %v4830_v11 = vld [vmem:[#allocation10 + $0x12c] sm:$0xf] }
 0x1bd   :  { %v5409_v29 = vpop.f32.mrf.mxu0 }
 0x1be   :  { %v5411_v31 = vpop.f32.mrf.mxu1  ;;  %2619 = vmatpush.bf16.msrb.mxu0 %v4340_v25  ;;  %2658 = vmatpush.bf16.msrb.mxu3 %v4344_v26  ;;  %v4020_v25 = vor.u32 %v4796_v60, %v4019_v14  ;;  %v4814_v26 = vld [vmem:[#allocation10 + $0xac] sm:$0xf]  ;;  %v4149_v60 = vld [vmem:[#allocation10 + $0x118] sm:$0xf0] }
 0x1bf   :  { %v4104_v32 = vor.u32 %v4814_v26, %v4101_v28  ;;  %v4826_v14 = vld [vmem:[#allocation10 + $0x10c] sm:$0xf]  ;;  %v4901_v26 = vld [vmem:[#allocation12 + $0x60] sm:$0xff] }
 0x1c0   :  { %2597 = vmatpush.bf16.msra.mxu2 %v4020_v25  ;;  %v4902_v25 = vld [vmem:[#allocation12 + $0x68] sm:$0xff] }
 0x1c2   :  { %2620 = vmatpush.bf16.msrb.mxu0 %v4324_v39  ;;  %2659 = vmatpush.bf16.msrb.mxu3 %v4328_v17  ;;  %v1872_v39 = vadd.f32 %v5409_v29, %v635_v36  ;;  %v4072_v17 = vor.u32 %v4806_v38, %v4069_v22  ;;  %v4854_v29 = vld [vmem:[#allocation10 + $0x1ec] sm:$0xf]  ;;  %v4892_v36 = vld [vmem:[#allocation12 + $0x18] sm:$0xff]  ;;  %v4891_v38 = vld [vmem:[#allocation12 + $0x10] sm:$0xff] }
 0x1c3   :  { %v4912_v22 = vld [vmem:[#allocation12 + $0xb8] sm:$0xff] }
 0x1c4   :  { %v1845_v57 = vpop.f32.mrf.mxu2  ;;  %v1885_v42 = vadd.f32 %v5411_v31, %v1872_v39 }
 0x1c5   :  { %v1873_v53 = vpop.f32.mrf.mxu0  ;;  %v1858_v58 = vpop.f32.mrf.mxu3  ;;  %v1846_v63 = vadd.f32 %v1845_v57, %v1833_v52  ;;  %v1916_v52 = vmax.f32 %v5394_v41, 0.0 }
 0x1c6   :  { %v1886_v54 = vpop.f32.mrf.mxu1  ;;  %2621 = vmatpush.bf16.msrb.mxu0 %v4308_v45  ;;  %2660 = vmatpush.bf16.msrb.mxu3 %v4312_v47  ;;  %v4798_v45 = vld [vmem:[#allocation10 + $0x2c] sm:$0xf]  ;;  %v4037_v47 = vld [vmem:[#allocation10 + $0x38] sm:$0xf0] }
 0x1c7   :  { %v1859_v3 = vadd.f32 %v1858_v58, %v1846_v63  ;;  %v4040_v50 = vor.u32 %v4798_v45, %v4037_v47  ;;  %v4261_v54 = vld [vmem:[#allocation10 + $0x1f8] sm:$0xf0]  ;;  %v4850_v63 = vld [vmem:[#allocation10 + $0x1cc] sm:$0xf] }
 0x1c8   :  { %v4264_v61 = vor.u32 %v4854_v29, %v4261_v54  ;;  %v4907_v29 = vld [vmem:[#allocation12 + $0x90] sm:$0xff]  ;;  %v4918_v54 = vld [vmem:[#allocation12 + $0xe8] sm:$0xff] }
 0x1c9   :  { %v1918_v9 = vmax.f32 %v1859_v3, 0.0  ;;  %v4842_v3 = vld [vmem:[#allocation10 + $0x18c] sm:$0xf] }
 0x1ca   :  { %2622 = vmatpush.bf16.msrb.mxu0 %v4292_v0  ;;  %2661 = vmatpush.bf16.msrb.mxu3 %v4296_v1  ;;  %v4245_v0 = vld [vmem:[#allocation10 + $0x1d8] sm:$0xf0]  ;;  %v4846_v1 = vld [vmem:[#allocation10 + $0x1ac] sm:$0xf]  ;;  %v4216_v4 = vor.u32 %v4842_v3, %v4213_v35 }
 0x1cb   :  { %v1921_v15 = vmax.f32 %v1915_v8, %v1918_v9  ;;  %v4248_v41 = vor.u32 %v4850_v63, %v4245_v0  ;;  %v4232_v2 = vor.u32 %v4846_v1, %v4229_v59  ;;  %v4834_v8 = vld [vmem:[#allocation10 + $0x14c] sm:$0xf]  ;;  %v4181_v9 = vld [vmem:[#allocation10 + $0x158] sm:$0xf0]  ;;  %v4915_v59 = vld [vmem:[#allocation12 + $0xd0] sm:$0xff] }
 0x1cc   :  { %v1847_v16 = vpop.f32.mrf.mxu2  ;;  %v4184_v10 = vor.u32 %v4834_v8, %v4181_v9  ;;  %v4916_v63 = vld [vmem:[#allocation12 + $0xd8] sm:$0xff]  ;;  %v4914_v8 = vld [vmem:[#allocation12 + $0xc8] sm:$0xff] }
 0x1cd   :  { %v1860_v18 = vpop.f32.mrf.mxu3  ;;  %v5416_v21 = vpack.c.bf16 %v1921_v15, %v1921_v15  ;;  %v4152_v15 = vor.u32 %v4826_v14, %v4149_v60  ;;  %v4904_v16 = vld [vmem:[#allocation12 + $0x78] sm:$0xff] }
 0x1ce   :  { %2623 = vmatpush.bf16.msrb.mxu0 %v4276_v12  ;;  %2662 = vmatpush.bf16.msrb.mxu3 %v4280_v13  ;;  %v4165_v12 = vld [vmem:[#allocation10 + $0x138] sm:$0xf0] }
 0x1cf   :  { %2533 = vmatmul.bf16.vlgmr.msrb.gmra.mxu1 %v5416_v21  ;;  %2572 = vmatmul.bf16.vlgmr.msra.gmra.mxu0 %v5416_v21  ;;  %v4168_v13 = vor.u32 %v4830_v11, %v4165_v12 }
 0x1d0   :  { %2611 = vmatmul.bf16.vlgmr.msra.gmra.mxu3 %v5416_v21  ;;  %2629 = vmatpush.bf16.msrb.mxu1 %v4136_v19 }
 0x1d4   :  { %2630 = vmatpush.bf16.msrb.mxu1 %v4120_v51  ;;  %v4895_v51 = vld [vmem:[#allocation12 + $0x30] sm:$0xff] }
 0x1d8   :  { %2631 = vmatpush.bf16.msrb.mxu1 %v4104_v32  ;;  %v4894_v32 = vld [vmem:[#allocation12 + $0x28] sm:$0xff] }
 0x1dc   :  { %2632 = vmatpush.bf16.msrb.mxu1 %v4088_v37  ;;  %v4898_v37 = vld [vmem:[#allocation12 + $0x48] sm:$0xff] }
 0x1e0   :  { %2633 = vmatpush.bf16.msrb.mxu1 %v4072_v17 }
 0x1e4   :  { %v1897_v44 = vpop.f32.mrf.mxu2  ;;  %2634 = vmatpush.bf16.msrb.mxu1 %v4056_v43  ;;  %v4889_v43 = vld [vmem:[#allocation12] sm:$0xff] }
 0x1e5   :  { %v1910_v27 = vpop.f32.mrf.mxu3  ;;  %v1898_v49 = vadd.f32 %v1897_v44, %v1885_v42  ;;  %v4911_v42 = vld [vmem:[#allocation12 + $0xb0] sm:$0xff]  ;;  %v4910_v44 = vld [vmem:[#allocation12 + $0xa8] sm:$0xff] }
 0x1e7   :  { %v1911_v20 = vadd.f32 %v1910_v27, %v1898_v49  ;;  %v4909_v49 = vld [vmem:[#allocation12 + $0xa0] sm:$0xff] }
 0x1e8   :  { %2635 = vmatpush.bf16.msrb.mxu1 %v4040_v50  ;;  %v4908_v50 = vld [vmem:[#allocation12 + $0x98] sm:$0xff] }
 0x1e9   :  { %v1919_v53 = vmax.f32 %v1911_v20, 0.0  ;;  %v4920_v20 = vld [vmem:[#allocation12 + $0xf8] sm:$0xff] }
 0x1ea   :  { %2975 = vmatpush.bf16.msra.mxu3 %v4920_v20  ;;  %v4936_v20 = vld [vmem:[#allocation15 + $0x38] sm:$0xff] }
 0x1eb   :  { %v1922_v56 = vmax.f32 %v1916_v52, %v1919_v53  ;;  %v4919_v52 = vld [vmem:[#allocation12 + $0xf0] sm:$0xff] }
 0x1ec   :  { %v1899_v31 = vpop.f32.mrf.mxu2  ;;  %2636 = vmatpush.bf16.msrb.mxu1 %v4024_v62 }
 0x1ed   :  { %v1912_v57 = vpop.f32.mrf.mxu3  ;;  %v1925_v58 = vpack.c.bf16 %v1922_v56, %v1922_v56  ;;  %v4906_v56 = vld [vmem:[#allocation12 + $0x88] sm:$0xff]  ;;  %v4917_v31 = vld [vmem:[#allocation12 + $0xe0] sm:$0xff] }
 0x1ee   :  { %2976 = vmatpush.bf16.msra.mxu3 %v4919_v52  ;;  %v4934_v52 = vld [vmem:[#allocation15 + $0x28] sm:$0xff] }
 0x1ef   :  { %2546 = vmatmul.bf16.vlgmr.msrb.gmra.mxu2 %v1925_v58  ;;  %2585 = vmatmul.bf16.vlgmr.msra.gmra.mxu1 %v1925_v58 }
 0x1f0   :  { %2624 = vmatmul.bf16.vlgmr.msrb.gmra.mxu0 %v1925_v58  ;;  %2663 = vmatmul.bf16.vlgmr.msrb.gmra.mxu3 %v1925_v58  ;;  %v4905_v58 = vld [vmem:[#allocation12 + $0x80] sm:$0xff] }
 0x1f1   :  { %2642 = vmatpush.bf16.msrb.mxu2 %v4264_v61  ;;  %2949 = vmatpush.bf16.msra.mxu1 %v4904_v16  ;;  %v2024_v61 = vperm.slane %v2022_v55, 0  ;;  %v2026_v16 = vperm.slane %v2022_v55, 2 }
 0x1f2   :  { %2977 = vmatpush.bf16.msra.mxu3 %v4918_v54  ;;  %v4954_v54 = vld [vmem:[%s5454_s8] ss:$0 sm:$0xff] }
 0x1f5   :  { %2643 = vmatpush.bf16.msrb.mxu2 %v4248_v41  ;;  %2950 = vmatpush.bf16.msra.mxu1 %v4903_v30 }
 0x1f6   :  { %2978 = vmatpush.bf16.msra.mxu3 %v4917_v31  ;;  %v4931_v31 = vld [vmem:[#allocation15 + $0x10] sm:$0xff] }
 0x1f9   :  { %2644 = vmatpush.bf16.msrb.mxu2 %v4232_v2  ;;  %2951 = vmatpush.bf16.msra.mxu1 %v4902_v25 }
 0x1fa   :  { %2979 = vmatpush.bf16.msra.mxu3 %v4916_v63 }
 0x1fd   :  { %2645 = vmatpush.bf16.msrb.mxu2 %v4216_v4  ;;  %2952 = vmatpush.bf16.msra.mxu1 %v4901_v26 }
 0x1fe   :  { %2980 = vmatpush.bf16.msra.mxu3 %v4915_v59  ;;  %v4929_v59 = vld [vmem:[#allocation15] sm:$0xff] }
 0x1ff   :  { %2598 = vmatmul.bf16.vlgmr.msra.gmra.mxu2 %v5404_v48  ;;  %2637 = vmatmul.bf16.vlgmr.msrb.gmra.mxu1 %v5404_v48  ;;  %v4896_v48 = vld [vmem:[#allocation12 + $0x38] sm:$0xff] }
 0x200   :  { %2936 = vmatpush.bf16.msra.mxu0 %v4896_v48 }
 0x201   :  { %2646 = vmatpush.bf16.msrb.mxu2 %v4200_v7  ;;  %2953 = vmatpush.bf16.msra.mxu1 %v4900_v33 }
 0x202   :  { %2981 = vmatpush.bf16.msra.mxu3 %v4914_v8 }
 0x204   :  { %2937 = vmatpush.bf16.msra.mxu0 %v4895_v51 }
 0x205   :  { %2647 = vmatpush.bf16.msrb.mxu2 %v4184_v10  ;;  %2954 = vmatpush.bf16.msra.mxu1 %v4899_v46 }
 0x208   :  { %2938 = vmatpush.bf16.msra.mxu0 %v4894_v32 }
 0x209   :  { %2648 = vmatpush.bf16.msrb.mxu2 %v4168_v13  ;;  %2955 = vmatpush.bf16.msra.mxu1 %v4898_v37  ;;  %v4913_v13 = vld [vmem:[#allocation12 + $0xc0] sm:$0xff] }
 0x20a   :  { %2982 = vmatpush.bf16.msra.mxu3 %v4913_v13 }
 0x20d   :  { %2649 = vmatpush.bf16.msrb.mxu2 %v4152_v15  ;;  %2956 = vmatpush.bf16.msra.mxu1 %v4897_v23 }
 0x210   :  { %2650 = vmatmul.bf16.vlgmr.msrb.gmra.mxu2 %v5416_v21  ;;  %v4893_v21 = vld [vmem:[#allocation12 + $0x20] sm:$0xff] }
 0x211   :  { %2939 = vmatpush.bf16.msra.mxu0 %v4893_v21  ;;  %2962 = vmatpush.bf16.msra.mxu2 %v4912_v22  ;;  %v4928_v22 = vld [vmem:[#allocation13 + $0x38] sm:$0xff] }
 0x212   :  { %3141 = vmatpush.bf16.msrb.mxu1 %v4936_v20 }
 0x215   :  { %2940 = vmatpush.bf16.msra.mxu0 %v4892_v36  ;;  %2963 = vmatpush.bf16.msra.mxu2 %v4911_v42  ;;  %v4924_v42 = vld [vmem:[#allocation13 + $0x18] sm:$0xff] }
 0x219   :  { %2941 = vmatpush.bf16.msra.mxu0 %v4891_v38  ;;  %2964 = vmatpush.bf16.msra.mxu2 %v4910_v44 }
 0x21d   :  { %2942 = vmatpush.bf16.msra.mxu0 %v4890_v40  ;;  %2965 = vmatpush.bf16.msra.mxu2 %v4909_v49  ;;  %v4925_v40 = vld [vmem:[#allocation13 + $0x20] sm:$0xff] }
 0x21e   :  { %v4921_v49 = vld [vmem:[#allocation13] sm:$0xff] }
 0x221   :  { %2943 = vmatpush.bf16.msra.mxu0 %v4889_v43  ;;  %2966 = vmatpush.bf16.msra.mxu2 %v4908_v50  ;;  %v4935_v50 = vld [vmem:[#allocation15 + $0x30] sm:$0xff] }
 0x222   :  { %3142 = vmatpush.bf16.msrb.mxu1 %v4935_v50 }
 0x225   :  { %2967 = vmatpush.bf16.msra.mxu2 %v4907_v29  ;;  %3058 = vmatpush.bf16.msrb.mxu0 %v4928_v22  ;;  %v4933_v29 = vld [vmem:[#allocation15 + $0x20] sm:$0xff] }
 0x226   :  { %3143 = vmatpush.bf16.msrb.mxu1 %v4934_v52 }
 0x229   :  { %2968 = vmatpush.bf16.msra.mxu2 %v4906_v56 }
 0x22a   :  { %3144 = vmatpush.bf16.msrb.mxu1 %v4933_v29 }
 0x22d   :  { %2969 = vmatpush.bf16.msra.mxu2 %v4905_v58 }
 0x22e   :  { %v5428_v18 = vpop.f32.mrf.mxu0 }
 0x22f   :  { %v2522_v2 = vadd.f32 %v5428_v18, %v2024_v61 }
 0x234   :  { %v2560_v19 = vpop.f32.mrf.mxu3 }
 0x235   :  { %v2561_v57 = vadd.f32 %v2560_v19, %v2025_v34 }
 0x236   :  { %v2523_v24 = vpop.f32.mrf.mxu0 }
 0x23c   :  { %v2562_v28 = vpop.f32.mrf.mxu3 }
 0x23d   :  { %v2027_v28 = vperm.slane %v2022_v55, 3  ;;  %v4932_v55 = vld [vmem:[#allocation15 + $0x18] sm:$0xff] }
 0x23e   :  { %3145 = vmatpush.bf16.msrb.mxu1 %v4932_v55 }
 0x242   :  { %3146 = vmatpush.bf16.msrb.mxu1 %v4931_v31 }
 0x24c   :  { %v2534_v39 = vpop.f32.mrf.mxu1  ;;  %v2573_v17 = vpop.f32.mrf.mxu0 }
 0x24d   :  { %v2574_v62 = vadd.f32 %v2573_v17, %v2561_v57  ;;  %v2535_v35 = vadd.f32 %v2534_v39, %v2522_v2  ;;  %v4927_v39 = vld [vmem:[#allocation13 + $0x30] sm:$0xff]  ;;  %v4926_v17 = vld [vmem:[#allocation13 + $0x28] sm:$0xff] }
 0x24e   :  { %3059 = vmatpush.bf16.msrb.mxu0 %v4927_v39  ;;  %v4955_v2 = vld [vmem:[%s5456_s10] ss:$0 sm:$0xff] }
 0x252   :  { %3060 = vmatpush.bf16.msrb.mxu0 %v4926_v17 }
 0x253   :  { %v2612_v27 = vpop.f32.mrf.mxu3 }
 0x254   :  { %v2536_v45 = vpop.f32.mrf.mxu1  ;;  %v2575_v47 = vpop.f32.mrf.mxu0 }
 0x255   :  { %v4922_v45 = vld [vmem:[#allocation13 + $0x8] sm:$0xff] }
 0x256   :  { %3061 = vmatpush.bf16.msrb.mxu0 %v4925_v40 }
 0x25a   :  { %3062 = vmatpush.bf16.msrb.mxu0 %v4924_v42 }
 0x25b   :  { %v2614_v53 = vpop.f32.mrf.mxu3 }
 0x26c   :  { %v2586_v0 = vpop.f32.mrf.mxu1 }
 0x26d   :  { %v2587_v41 = vadd.f32 %v2586_v0, %v2574_v62  ;;  %v2625_v1 = vpop.f32.mrf.mxu0 }
 0x26f   :  { %v2669_v3 = vmax.f32 %v2587_v41, 0.0 }
 0x271   :  { %v2673_v4 = vpack.c.bf16 %v2669_v3, %v2669_v3 }
 0x272   :  { %v2547_v5 = vpop.f32.mrf.mxu2 }
 0x273   :  { %v2548_v6 = vadd.f32 %v2547_v5, %v2535_v35  ;;  %v2664_v7 = vpop.f32.mrf.mxu3  ;;  %2957 = vmatmul.bf16.vlgmr.msra.gmra.mxu1 %v2673_v4 }
 0x274   :  { %v2588_v9 = vpop.f32.mrf.mxu1 }
 0x275   :  { %v2668_v10 = vmax.f32 %v2548_v6, 0.0  ;;  %v2627_v11 = vpop.f32.mrf.mxu0 }
 0x277   :  { %v2672_v12 = vpack.c.bf16 %v2668_v10, %v2668_v10 }
 0x279   :  { %2944 = vmatmul.bf16.vlgmr.msra.gmra.mxu0 %v2672_v12 }
 0x27a   :  { %v2549_v14 = vpop.f32.mrf.mxu2 }
 0x27b   :  { %v2666_v60 = vpop.f32.mrf.mxu3 }
 0x27c   :  { %v2638_v15 = vpop.f32.mrf.mxu1 }
 0x27d   :  { %v2639_v32 = vadd.f32 %v2638_v15, %v2027_v28 }
 0x282   :  { %v2599_v18 = vpop.f32.mrf.mxu2 }
 0x283   :  { %v2600_v19 = vadd.f32 %v2599_v18, %v2026_v16 }
 0x284   :  { %v2640_v30 = vpop.f32.mrf.mxu1 }
 0x285   :  { %v2613_v48 = vadd.f32 %v2612_v27, %v2600_v19  ;;  %v4923_v27 = vld [vmem:[#allocation13 + $0x10] sm:$0xff] }
 0x286   :  { %3063 = vmatpush.bf16.msrb.mxu0 %v4923_v27 }
 0x287   :  { %v2626_v24 = vadd.f32 %v2625_v1, %v2613_v48  ;;  %v4930_v1 = vld [vmem:[#allocation15 + $0x8] sm:$0xff] }
 0x288   :  { %3147 = vmatpush.bf16.msrb.mxu1 %v4930_v1 }
 0x289   :  { %v2670_v25 = vmax.f32 %v2626_v24, 0.0 }
 0x28a   :  { %v2601_v51 = vpop.f32.mrf.mxu2  ;;  %3064 = vmatpush.bf16.msrb.mxu0 %v4922_v45 }
 0x28b   :  { %v2674_v26 = vpack.c.bf16 %v2670_v25, %v2670_v25 }
 0x28c   :  { %3148 = vmatpush.bf16.msrb.mxu1 %v4929_v59 }
 0x28d   :  { %2970 = vmatmul.bf16.vlgmr.msra.gmra.mxu2 %v2674_v26 }
 0x28e   :  { %3065 = vmatpush.bf16.msrb.mxu0 %v4921_v49 }
 0x293   :  { %v2651_v33 = vpop.f32.mrf.mxu2 }
 0x294   :  { %v2652_v21 = vadd.f32 %v2651_v33, %v2639_v32 }
 0x296   :  { %v2665_v46 = vadd.f32 %v2664_v7, %v2652_v21  ;;  %v4956_v7 = vld [vmem:[%s5458_s12] ss:$0 sm:$0xff] }
 0x298   :  { %v2671_v36 = vmax.f32 %v2665_v46, 0.0 }
 0x29a   :  { %v2675_v37 = vpack.c.bf16 %v2671_v36, %v2671_v36 }
 0x29b   :  { %v2653_v38 = vpop.f32.mrf.mxu2 }
 0x29c   :  { %2983 = vmatmul.bf16.vlgmr.msra.gmra.mxu3 %v2675_v37 }
 0x2f0   :  { %v2958_v23 = vpop.f32.mrf.mxu1 }
 0x2f6   :  { %v2945_v43 = vpop.f32.mrf.mxu0 }
 0x2f7   :  { %v2946_v34 = vadd.f32 %v4954_v54, %v2945_v43 }
 0x2f8   :  { %v2960_v44 = vpop.f32.mrf.mxu1 }
 0x2f9   :  { %v2959_v57 = vadd.f32 %v2958_v23, %v2946_v34 }
 0x2fe   :  { %v2947_v47 = vpop.f32.mrf.mxu0 }
 0x310   :  { %v2971_v53 = vpop.f32.mrf.mxu2 }
 0x311   :  { %v2972_v58 = vadd.f32 %v2971_v53, %v2959_v57 }
 0x318   :  { %v2973_v56 = vpop.f32.mrf.mxu2 }
 0x31f   :  { %v2984_v61 = vpop.f32.mrf.mxu3 }
 0x320   :  { %v2985_v62 = vadd.f32 %v2984_v61, %v2972_v58 }
 0x322   :  { %v2988_v63 = vmax.f32 %v2985_v62, 0.0 }
 0x324   :  { %v2989_v0 = vpack.c.bf16 %v2988_v63, %v2988_v63 }
 0x326   :  { %3066 = vmatmul.bf16.vlgmr.msrb.gmra.mxu0 %v2989_v0 }
 0x327   :  { %v2986_v41 = vpop.f32.mrf.mxu3 }
 0x3a3   :  { %v3067_v3 = vpop.f32.mrf.mxu0 }
 0x3a4   :  { %v3068_v35 = vadd.f32 %v4955_v2, %v3067_v3 }
 0x3a6   :  { %v3071_v4 = vmax.f32 %v3068_v35, 0.0 }
 0x3a8   :  { %v3072_v5 = vpack.c.bf16 %v3071_v4, %v3071_v4 }
 0x3aa   :  { %3149 = vmatmul.bf16.vlgmr.msrb.gmra.mxu1 %v3072_v5 }
 0x3ab   :  { %v3069_v6 = vpop.f32.mrf.mxu0 }
 0x427   :  { %v3150_v8 = vpop.f32.mrf.mxu1 }
 0x428   :  { %v3151_v9 = vadd.f32 %v4956_v7, %v3150_v8 }
 0x42a   :  { %v3154_v10 = vsub.f32 0.0, %v3151_v9 }
 0x42c   :  { %v3155_v11 = vmul.f32 1.442695, %v3154_v10 }
 0x42e   :  { %4957 = vpow2.f32 %v3155_v11 }
 0x42f   :  { %v3152_v12 = vpop.f32.mrf.mxu1 }
 0x434   :  { %v4958_v13 = vpop.eup %4957 }
 0x435   :  { %v3157_v14 = vadd.f32 1.0, %v4958_v13 }
 0x437   :  { %4959 = vrcp.f32 %v3157_v14 }
 0x43d   :  { %v4960_v60 = vpop.eup %4959 }
 0x43e   :  { %3159 = vst [vmem:[%s5459_s13] sm:$0xff] %v4960_v60 }
 0x43f   :  { %3164 = vsyncpa [#allocation3], 1 }
 0x440   :  { %3165 = vsyncpa [#allocation5], 1 }
 0x441   :  { %3166 = vsyncpa [#allocation8], 1 }
 0x442   :  { %3167 = vsyncpa [#allocation11], 1 }
 0x443   :  { %3168 = vsyncpa [#allocation14], 1 }

</bundles_post_ra>
